<compile_context>
chip_gen: v7x
topology: tpu7x:2x2x1
jax: 0.10.0
libtpu: 0.0.40
codegen_flags: <defaults>
</compile_context>

<pallas_src>
import functools

import jax
import jax.numpy as jnp
from jax.experimental import pallas as pl
from jax.experimental.pallas import tpu as pltpu

BATCH_TILE = 8  # one sublane group per grid step


# ---------------------------------------------------------------------------
# Gate nonlinearity: 2 full-width EUP passes, then slice.
# ---------------------------------------------------------------------------
def _gate_act(gates, c, H):
    sig = jax.nn.sigmoid(gates)          # one EUP pass over the full (BT, 4H) vreg
    tnh = jnp.tanh(gates)                # one EUP pass
    i_g = sig[:, 0 * H:1 * H]
    f_g = sig[:, 1 * H:2 * H]
    g_g = tnh[:, 2 * H:3 * H]
    o_g = sig[:, 3 * H:4 * H]
    c_new = f_g * c + i_g * g_g
    h_new = o_g * jnp.tanh(c_new)
    return h_new, c_new


# ---------------------------------------------------------------------------
# Pallas kernel: encoder + autoregressive decoder for ONE 8-row batch tile.
# ---------------------------------------------------------------------------
def _lstm_ed_kernel(*refs, T, BT, F, H, training):
    if training:
        (x_ref, wih_cat_ref, b_cat_ref, whh_e_ref, whh_d_ref,
         wout_ref, bout_ref, out_ref, hstack_ref) = refs
    else:
        (x_ref, wih_e_ref, b_e_ref, whh_e_ref, wdec_ref, bdec_ref,
         wout_ref, bout_ref, out_ref, hstack_ref) = refs

    x = x_ref[...]                       # (T*BT, F) time-major within the tile
    whh_e = whh_e_ref[...]               # (H, 4H)

    # ----- hoisted input projection(s): one matmul up front.
    if training:
        # Teacher forcing: encoder AND decoder projections of x are needed;
        # one fused (T*BT, F) @ (F, 8H) matmul, split on clean vreg boundaries.
        pre = jnp.dot(x, wih_cat_ref[...],
                      preferred_element_type=jnp.float32) + b_cat_ref[...]
        pre_enc = pre[:, :4 * H]         # lanes [0, 128)
        pre_dec = pre[:, 4 * H:]         # lanes [128, 256)
    else:
        pre_enc = jnp.dot(x, wih_e_ref[...],
                          preferred_element_type=jnp.float32) + b_e_ref[...]

    # ----- encoder: serial scan, one MXU call per step (aligned 8-row slices).
    h = jnp.zeros((BT, H), jnp.float32)
    c = jnp.zeros((BT, H), jnp.float32)
    for t in range(T):                   # T static -> fully unrolled
        gates = pre_enc[t * BT:(t + 1) * BT, :] + jnp.dot(
            h, whh_e, preferred_element_type=jnp.float32)
        h, c = _gate_act(gates, c, H)

    # ----- decoder: reversed time, output Linear deferred out of the loop.
    if training:
        whh_d = whh_d_ref[...]           # (H, 4H)
        for k in range(T):
            i = T - 1 - k
            hstack_ref[i * BT:(i + 1) * BT, :] = h     # aligned 8-row store
            gates = pre_dec[i * BT:(i + 1) * BT, :] + jnp.dot(
                h, whh_d, preferred_element_type=jnp.float32)
            h, c = _gate_act(gates, c, H)
    else:
        # Eval mode: input is the module's own output Linear(h); the chain is
        # fused wrapper-side:  Wdec = Wout@Wih_d + Whh_d,  b_dec = bout@Wih_d + b_d.
        wdec = wdec_ref[...]             # (H, 4H)
        bdec = bdec_ref[...]             # (1, 4H)
        for k in range(T):
            i = T - 1 - k
            hstack_ref[i * BT:(i + 1) * BT, :] = h
            gates = jnp.dot(h, wdec, preferred_element_type=jnp.float32) + bdec
            h, c = _gate_act(gates, c, H)

    # ----- deferred output projection: one matmul + one bulk store.
    out = jnp.dot(hstack_ref[...], wout_ref[...],
                  preferred_element_type=jnp.float32) + bout_ref[...]
    out_ref[...] = out.astype(out_ref.dtype)


# ---------------------------------------------------------------------------
# Wrapper (parameter plumbing, fusion, batch padding/tiling stay in plain JAX).
# ---------------------------------------------------------------------------
def lstm_ed_forward(x, params, training=False):
    """x: (B, T, F) float32, batch-first like the PyTorch module."""
    x = x.astype(jnp.float32)
    B, T, F = x.shape
    H = params["whh_enc"].shape[1]              # whh: (4H, H)
    BT = BATCH_TILE
    n_tiles = -(-B // BT)
    Bp = n_tiles * BT

    # Pre-transpose weights, fold the two bias vectors together (b_ih + b_hh).
    wih_e_t = params["wih_enc"].T               # (F, 4H)
    whh_e_t = params["whh_enc"].T               # (H, 4H)
    b_e = (params["bih_enc"] + params["bhh_enc"]).reshape(1, 4 * H)
    wih_d_t = params["wih_dec"].T               # (F, 4H)
    whh_d_t = params["whh_dec"].T               # (H, 4H)
    b_d = (params["bih_dec"] + params["bhh_dec"]).reshape(1, 4 * H)
    wout_t = params["wout"].T                   # (H, F)
    bout = params["bout"].reshape(1, F)         # (1, F)

    # Pad batch to a multiple of 8 (one sublane group); padded rows are
    # independent batch elements and are dropped at the end.
    if Bp != B:
        x = jnp.concatenate([x, jnp.zeros((Bp - B, T, F), jnp.float32)], axis=0)

    # (Bp,T,F) -> (tiles, BT, T, F) -> (tiles, T, BT, F) -> (tiles*T*BT, F):
    # time-major within each 8-row batch tile so every per-step access in the
    # kernel is a static, sublane-aligned slice.
    x2d = x.reshape(n_tiles, BT, T, F).transpose(0, 2, 1, 3).reshape(
        n_tiles * T * BT, F)

    x_spec = pl.BlockSpec((T * BT, F), lambda bi: (bi, 0))
    out_spec = pl.BlockSpec((T * BT, F), lambda bi: (bi, 0))
    # Weight blocks: same block index for every grid step -> stay resident.
    spec_h4 = pl.BlockSpec((H, 4 * H), lambda bi: (0, 0))
    spec_hf = pl.BlockSpec((H, F), lambda bi: (0, 0))
    spec_1f = pl.BlockSpec((1, F), lambda bi: (0, 0))

    if training:
        # Fused encoder+decoder input projection weights.
        wih_cat = jnp.concatenate([wih_e_t, wih_d_t], axis=1)   # (F, 8H)
        b_cat = jnp.concatenate([b_e, b_d], axis=1)             # (1, 8H)
        inputs = (x2d, wih_cat, b_cat, whh_e_t, whh_d_t, wout_t, bout)
        in_specs = [
            x_spec,
            pl.BlockSpec((F, 8 * H), lambda bi: (0, 0)),
            pl.BlockSpec((1, 8 * H), lambda bi: (0, 0)),
            spec_h4,
            spec_h4,
            spec_hf,
            spec_1f,
        ]
    else:
        # Fuse  out = h@Wout + bout ; gates = out@Wih_d + h@Whh_d + b_d
        # into  gates = h @ Wdec + b_dec  (single MXU call per step).
        wdec = wout_t @ wih_d_t + whh_d_t                        # (H, 4H)
        bdec = b_d + bout @ wih_d_t                              # (1, 4H)
        inputs = (x2d, wih_e_t, b_e, whh_e_t, wdec, bdec, wout_t, bout)
        in_specs = [
            x_spec,
            pl.BlockSpec((F, 4 * H), lambda bi: (0, 0)),
            pl.BlockSpec((1, 4 * H), lambda bi: (0, 0)),
            spec_h4,
            spec_h4,
            pl.BlockSpec((1, 4 * H), lambda bi: (0, 0)),
            spec_hf,
            spec_1f,
        ]

    kernel = functools.partial(_lstm_ed_kernel, T=T, BT=BT, F=F, H=H,
                               training=training)

    out2d = pl.pallas_call(
        kernel,
        out_shape=jax.ShapeDtypeStruct((n_tiles * T * BT, F), jnp.float32),
        grid=(n_tiles,),
        in_specs=in_specs,
        out_specs=out_spec,
        scratch_shapes=[pltpu.VMEM((T * BT, H), jnp.float32)],   # h_stack
        compiler_params=pltpu.CompilerParams(
            dimension_semantics=("parallel",)),                  # batch tiles
    )(*inputs)

    out = out2d.reshape(n_tiles, T, BT, F).transpose(0, 2, 1, 3).reshape(
        Bp, T, F)
    return out[:B]                                               # drop padding


# ---------------------------------------------------------------------------
# Deterministic parameter init (PyTorch-style U(-1/sqrt(H), 1/sqrt(H))).
# ---------------------------------------------------------------------------
def init_params(key, n_features, hidden_size):
    F, H = n_features, hidden_size
    k = 1.0 / jnp.sqrt(jnp.float32(H))
    names_shapes = [
        ("wih_enc", (4 * H, F)), ("whh_enc", (4 * H, H)),
        ("bih_enc", (4 * H,)), ("bhh_enc", (4 * H,)),
        ("wih_dec", (4 * H, F)), ("whh_dec", (4 * H, H)),
        ("bih_dec", (4 * H,)), ("bhh_dec", (4 * H,)),
        ("wout", (F, H)), ("bout", (F,)),
    ]
    params = {}
    keys = jax.random.split(key, len(names_shapes))
    for (name, shape), kk in zip(names_shapes, keys):
        params[name] = jax.random.uniform(kk, shape, jnp.float32, -k, k)
    return params


# ---------------------------------------------------------------------------
# Pure-JAX reference (mirrors the PyTorch forward exactly) for verification.
# ---------------------------------------------------------------------------
def ref_forward(x, params, training=False):
    x = x.astype(jnp.float32)
    B, T, F = x.shape
    H = params["whh_enc"].shape[1]

    def cell(xt, h, c, wih, whh, bih, bhh):
        g = xt @ wih.T + bih + h @ whh.T + bhh
        i_g = jax.nn.sigmoid(g[:, 0:H])
        f_g = jax.nn.sigmoid(g[:, H:2 * H])
        g_g = jnp.tanh(g[:, 2 * H:3 * H])
        o_g = jax.nn.sigmoid(g[:, 3 * H:4 * H])
        c = f_g * c + i_g * g_g
        h = o_g * jnp.tanh(c)
        return h, c

    h = jnp.zeros((B, H), jnp.float32)
    c = jnp.zeros((B, H), jnp.float32)
    for t in range(T):
        h, c = cell(x[:, t], h, c, params["wih_enc"], params["whh_enc"],
                    params["bih_enc"], params["bhh_enc"])
    out = jnp.zeros((B, T, F), jnp.float32)
    for i in reversed(range(T)):
        oi = h @ params["wout"].T + params["bout"]
        out = out.at[:, i, :].set(oi)
        xin = x[:, i] if training else oi
        h, c = cell(xin, h, c, params["wih_dec"], params["whh_dec"],
                    params["bih_dec"], params["bhh_dec"])
    return out


if __name__ == "__main__":
    # Module config: n_features=8, hidden_size=32, n_layers=(1,1),
    # use_bias=(True,True), dropout=(0,0); batch=2, seq=8.
    B, T, F, H = 2, 8, 8, 32

    key = jax.random.PRNGKey(0)
    k_x, k_p = jax.random.split(key)
    x = jax.random.normal(k_x, (B, T, F), jnp.float32)
    params = init_params(k_p, F, H)

    # Eval-mode forward (autoregressive) — what the PyTorch module does at
    # inference time.  Tolerance 1e-4 because the decoder fusion reassociates
    # the f32 matmul chain.
    out_eval = jax.block_until_ready(lstm_ed_forward(x, params, training=False))
    ref_eval = ref_forward(x, params, training=False)
    assert out_eval.shape == (B, T, F)
    assert jnp.allclose(out_eval, ref_eval, rtol=1e-4, atol=1e-4), \
        "eval-mode mismatch vs reference"

    # Training-mode forward (teacher forcing) sanity check.
    out_trn = jax.block_until_ready(lstm_ed_forward(x, params, training=True))
    ref_trn = ref_forward(x, params, training=True)
    assert jnp.allclose(out_trn, ref_trn, rtol=1e-4, atol=1e-4), \
        "training-mode mismatch vs reference"

    print("KERNEL_OK")
</pallas_src>

<mosaic_0001>
module attributes {stable_mosaic.version = 11 : i64} {
  func.func @_lstm_ed_kernel(%arg0: i32, %arg1: memref<64x8xf32, #tpu.memory_space<vmem>>, %arg2: memref<8x128xf32, #tpu.memory_space<vmem>>, %arg3: memref<1x128xf32, #tpu.memory_space<vmem>>, %arg4: memref<32x128xf32, #tpu.memory_space<vmem>>, %arg5: memref<32x128xf32, #tpu.memory_space<vmem>>, %arg6: memref<1x128xf32, #tpu.memory_space<vmem>>, %arg7: memref<32x8xf32, #tpu.memory_space<vmem>>, %arg8: memref<1x8xf32, #tpu.memory_space<vmem>>, %arg9: memref<64x8xf32, #tpu.memory_space<vmem>>, %arg10: memref<64x32xf32, #tpu.memory_space<vmem>>) attributes {dimension_semantics = [#tpu.dimension_semantics<parallel>], iteration_bounds = array<i64: 1>, scalar_prefetch = 0 : i64, scratch_operands = 1 : i64, tpu.core_type = #tpu.core_type<tc>, window_params = [{transform_indices = @transform_0, window_bounds = array<i64: 64, 8>}, {pipeline_mode = #tpu.pipeline_mode<synchronous>, transform_indices = @transform_1, window_bounds = array<i64: 8, 128>}, {pipeline_mode = #tpu.pipeline_mode<synchronous>, transform_indices = @transform_2, window_bounds = array<i64: 1, 128>}, {pipeline_mode = #tpu.pipeline_mode<synchronous>, transform_indices = @transform_3, window_bounds = array<i64: 32, 128>}, {pipeline_mode = #tpu.pipeline_mode<synchronous>, transform_indices = @transform_4, window_bounds = array<i64: 32, 128>}, {pipeline_mode = #tpu.pipeline_mode<synchronous>, transform_indices = @transform_5, window_bounds = array<i64: 1, 128>}, {pipeline_mode = #tpu.pipeline_mode<synchronous>, transform_indices = @transform_6, window_bounds = array<i64: 32, 8>}, {pipeline_mode = #tpu.pipeline_mode<synchronous>, transform_indices = @transform_7, window_bounds = array<i64: 1, 8>}, {transform_indices = @transform_8, window_bounds = array<i64: 64, 8>}]} {
    %c0 = arith.constant 0 : index
    %c0_0 = arith.constant 0 : index
    %0 = vector.load %arg1[%c0, %c0_0] : memref<64x8xf32, #tpu.memory_space<vmem>>, vector<64x8xf32>
    %c0_1 = arith.constant 0 : index
    %c0_2 = arith.constant 0 : index
    %1 = vector.load %arg4[%c0_1, %c0_2] : memref<32x128xf32, #tpu.memory_space<vmem>>, vector<32x128xf32>
    %c0_3 = arith.constant 0 : index
    %c0_4 = arith.constant 0 : index
    %2 = vector.load %arg2[%c0_3, %c0_4] : memref<8x128xf32, #tpu.memory_space<vmem>>, vector<8x128xf32>
    %cst = arith.constant dense<0.000000e+00> : vector<64x128xf32>
    %3 = tpu.matmul %0, %2, %cst {dimension_numbers = #tpu.dot_dimension_numbers<[1], [0], [0], [1], [0, 0, 1, 1], [], []>} : vector<64x8xf32>, vector<8x128xf32>, vector<64x128xf32> -> vector<64x128xf32>
    %c0_5 = arith.constant 0 : index
    %c0_6 = arith.constant 0 : index
    %4 = vector.load %arg3[%c0_5, %c0_6] : memref<1x128xf32, #tpu.memory_space<vmem>>, vector<1x128xf32>
    %5 = vector.broadcast %4 : vector<1x128xf32> to vector<64x128xf32>
    %6 = arith.addf %3, %5 : vector<64x128xf32>
    %cst_7 = arith.constant 0.000000e+00 : f32
    %7 = vector.broadcast %cst_7 : f32 to vector<8x32xf32>
    %cst_8 = arith.constant 0.000000e+00 : f32
    %8 = vector.broadcast %cst_8 : f32 to vector<8x32xf32>
    %9 = vector.extract_strided_slice %6 {offsets = [0, 0], sizes = [8, 128], strides = [1, 1]} : vector<64x128xf32> to vector<8x128xf32>
    %cst_9 = arith.constant dense<0.000000e+00> : vector<8x128xf32>
    %10 = tpu.matmul %7, %1, %cst_9 {dimension_numbers = #tpu.dot_dimension_numbers<[1], [0], [0], [1], [0, 0, 1, 1], [], []>} : vector<8x32xf32>, vector<32x128xf32>, vector<8x128xf32> -> vector<8x128xf32>
    %11 = arith.addf %9, %10 : vector<8x128xf32>
    %12 = arith.negf %11 : vector<8x128xf32>
    %13 = math.exp %12 : vector<8x128xf32>
    %cst_10 = arith.constant 1.000000e+00 : f32
    %14 = vector.broadcast %cst_10 : f32 to vector<8x128xf32>
    %15 = arith.addf %14, %13 : vector<8x128xf32>
    %16 = arith.divf %14, %15 : vector<8x128xf32>
    %17 = math.tanh %11 : vector<8x128xf32>
    %18 = vector.extract_strided_slice %16 {offsets = [0, 0], sizes = [8, 32], strides = [1, 1]} : vector<8x128xf32> to vector<8x32xf32>
    %19 = vector.extract_strided_slice %16 {offsets = [0, 32], sizes = [8, 32], strides = [1, 1]} : vector<8x128xf32> to vector<8x32xf32>
    %20 = vector.extract_strided_slice %17 {offsets = [0, 64], sizes = [8, 32], strides = [1, 1]} : vector<8x128xf32> to vector<8x32xf32>
    %21 = vector.extract_strided_slice %16 {offsets = [0, 96], sizes = [8, 32], strides = [1, 1]} : vector<8x128xf32> to vector<8x32xf32>
    %22 = arith.mulf %19, %8 : vector<8x32xf32>
    %23 = arith.mulf %18, %20 : vector<8x32xf32>
    %24 = arith.addf %22, %23 : vector<8x32xf32>
    %25 = math.tanh %24 : vector<8x32xf32>
    %26 = arith.mulf %21, %25 : vector<8x32xf32>
    %27 = vector.extract_strided_slice %6 {offsets = [8, 0], sizes = [8, 128], strides = [1, 1]} : vector<64x128xf32> to vector<8x128xf32>
    %cst_11 = arith.constant dense<0.000000e+00> : vector<8x128xf32>
    %28 = tpu.matmul %26, %1, %cst_11 {dimension_numbers = #tpu.dot_dimension_numbers<[1], [0], [0], [1], [0, 0, 1, 1], [], []>} : vector<8x32xf32>, vector<32x128xf32>, vector<8x128xf32> -> vector<8x128xf32>
    %29 = arith.addf %27, %28 : vector<8x128xf32>
    %30 = arith.negf %29 : vector<8x128xf32>
    %31 = math.exp %30 : vector<8x128xf32>
    %cst_12 = arith.constant 1.000000e+00 : f32
    %32 = vector.broadcast %cst_12 : f32 to vector<8x128xf32>
    %33 = arith.addf %32, %31 : vector<8x128xf32>
    %34 = arith.divf %32, %33 : vector<8x128xf32>
    %35 = math.tanh %29 : vector<8x128xf32>
    %36 = vector.extract_strided_slice %34 {offsets = [0, 0], sizes = [8, 32], strides = [1, 1]} : vector<8x128xf32> to vector<8x32xf32>
    %37 = vector.extract_strided_slice %34 {offsets = [0, 32], sizes = [8, 32], strides = [1, 1]} : vector<8x128xf32> to vector<8x32xf32>
    %38 = vector.extract_strided_slice %35 {offsets = [0, 64], sizes = [8, 32], strides = [1, 1]} : vector<8x128xf32> to vector<8x32xf32>
    %39 = vector.extract_strided_slice %34 {offsets = [0, 96], sizes = [8, 32], strides = [1, 1]} : vector<8x128xf32> to vector<8x32xf32>
    %40 = arith.mulf %37, %24 : vector<8x32xf32>
    %41 = arith.mulf %36, %38 : vector<8x32xf32>
    %42 = arith.addf %40, %41 : vector<8x32xf32>
    %43 = math.tanh %42 : vector<8x32xf32>
    %44 = arith.mulf %39, %43 : vector<8x32xf32>
    %45 = vector.extract_strided_slice %6 {offsets = [16, 0], sizes = [8, 128], strides = [1, 1]} : vector<64x128xf32> to vector<8x128xf32>
    %cst_13 = arith.constant dense<0.000000e+00> : vector<8x128xf32>
    %46 = tpu.matmul %44, %1, %cst_13 {dimension_numbers = #tpu.dot_dimension_numbers<[1], [0], [0], [1], [0, 0, 1, 1], [], []>} : vector<8x32xf32>, vector<32x128xf32>, vector<8x128xf32> -> vector<8x128xf32>
    %47 = arith.addf %45, %46 : vector<8x128xf32>
    %48 = arith.negf %47 : vector<8x128xf32>
    %49 = math.exp %48 : vector<8x128xf32>
    %cst_14 = arith.constant 1.000000e+00 : f32
    %50 = vector.broadcast %cst_14 : f32 to vector<8x128xf32>
    %51 = arith.addf %50, %49 : vector<8x128xf32>
    %52 = arith.divf %50, %51 : vector<8x128xf32>
    %53 = math.tanh %47 : vector<8x128xf32>
    %54 = vector.extract_strided_slice %52 {offsets = [0, 0], sizes = [8, 32], strides = [1, 1]} : vector<8x128xf32> to vector<8x32xf32>
    %55 = vector.extract_strided_slice %52 {offsets = [0, 32], sizes = [8, 32], strides = [1, 1]} : vector<8x128xf32> to vector<8x32xf32>
    %56 = vector.extract_strided_slice %53 {offsets = [0, 64], sizes = [8, 32], strides = [1, 1]} : vector<8x128xf32> to vector<8x32xf32>
    %57 = vector.extract_strided_slice %52 {offsets = [0, 96], sizes = [8, 32], strides = [1, 1]} : vector<8x128xf32> to vector<8x32xf32>
    %58 = arith.mulf %55, %42 : vector<8x32xf32>
    %59 = arith.mulf %54, %56 : vector<8x32xf32>
    %60 = arith.addf %58, %59 : vector<8x32xf32>
    %61 = math.tanh %60 : vector<8x32xf32>
    %62 = arith.mulf %57, %61 : vector<8x32xf32>
    %63 = vector.extract_strided_slice %6 {offsets = [24, 0], sizes = [8, 128], strides = [1, 1]} : vector<64x128xf32> to vector<8x128xf32>
    %cst_15 = arith.constant dense<0.000000e+00> : vector<8x128xf32>
    %64 = tpu.matmul %62, %1, %cst_15 {dimension_numbers = #tpu.dot_dimension_numbers<[1], [0], [0], [1], [0, 0, 1, 1], [], []>} : vector<8x32xf32>, vector<32x128xf32>, vector<8x128xf32> -> vector<8x128xf32>
    %65 = arith.addf %63, %64 : vector<8x128xf32>
    %66 = arith.negf %65 : vector<8x128xf32>
    %67 = math.exp %66 : vector<8x128xf32>
    %cst_16 = arith.constant 1.000000e+00 : f32
    %68 = vector.broadcast %cst_16 : f32 to vector<8x128xf32>
    %69 = arith.addf %68, %67 : vector<8x128xf32>
    %70 = arith.divf %68, %69 : vector<8x128xf32>
    %71 = math.tanh %65 : vector<8x128xf32>
    %72 = vector.extract_strided_slice %70 {offsets = [0, 0], sizes = [8, 32], strides = [1, 1]} : vector<8x128xf32> to vector<8x32xf32>
    %73 = vector.extract_strided_slice %70 {offsets = [0, 32], sizes = [8, 32], strides = [1, 1]} : vector<8x128xf32> to vector<8x32xf32>
    %74 = vector.extract_strided_slice %71 {offsets = [0, 64], sizes = [8, 32], strides = [1, 1]} : vector<8x128xf32> to vector<8x32xf32>
    %75 = vector.extract_strided_slice %70 {offsets = [0, 96], sizes = [8, 32], strides = [1, 1]} : vector<8x128xf32> to vector<8x32xf32>
    %76 = arith.mulf %73, %60 : vector<8x32xf32>
    %77 = arith.mulf %72, %74 : vector<8x32xf32>
    %78 = arith.addf %76, %77 : vector<8x32xf32>
    %79 = math.tanh %78 : vector<8x32xf32>
    %80 = arith.mulf %75, %79 : vector<8x32xf32>
    %81 = vector.extract_strided_slice %6 {offsets = [32, 0], sizes = [8, 128], strides = [1, 1]} : vector<64x128xf32> to vector<8x128xf32>
    %cst_17 = arith.constant dense<0.000000e+00> : vector<8x128xf32>
    %82 = tpu.matmul %80, %1, %cst_17 {dimension_numbers = #tpu.dot_dimension_numbers<[1], [0], [0], [1], [0, 0, 1, 1], [], []>} : vector<8x32xf32>, vector<32x128xf32>, vector<8x128xf32> -> vector<8x128xf32>
    %83 = arith.addf %81, %82 : vector<8x128xf32>
    %84 = arith.negf %83 : vector<8x128xf32>
    %85 = math.exp %84 : vector<8x128xf32>
    %cst_18 = arith.constant 1.000000e+00 : f32
    %86 = vector.broadcast %cst_18 : f32 to vector<8x128xf32>
    %87 = arith.addf %86, %85 : vector<8x128xf32>
    %88 = arith.divf %86, %87 : vector<8x128xf32>
    %89 = math.tanh %83 : vector<8x128xf32>
    %90 = vector.extract_strided_slice %88 {offsets = [0, 0], sizes = [8, 32], strides = [1, 1]} : vector<8x128xf32> to vector<8x32xf32>
    %91 = vector.extract_strided_slice %88 {offsets = [0, 32], sizes = [8, 32], strides = [1, 1]} : vector<8x128xf32> to vector<8x32xf32>
    %92 = vector.extract_strided_slice %89 {offsets = [0, 64], sizes = [8, 32], strides = [1, 1]} : vector<8x128xf32> to vector<8x32xf32>
    %93 = vector.extract_strided_slice %88 {offsets = [0, 96], sizes = [8, 32], strides = [1, 1]} : vector<8x128xf32> to vector<8x32xf32>
    %94 = arith.mulf %91, %78 : vector<8x32xf32>
    %95 = arith.mulf %90, %92 : vector<8x32xf32>
    %96 = arith.addf %94, %95 : vector<8x32xf32>
    %97 = math.tanh %96 : vector<8x32xf32>
    %98 = arith.mulf %93, %97 : vector<8x32xf32>
    %99 = vector.extract_strided_slice %6 {offsets = [40, 0], sizes = [8, 128], strides = [1, 1]} : vector<64x128xf32> to vector<8x128xf32>
    %cst_19 = arith.constant dense<0.000000e+00> : vector<8x128xf32>
    %100 = tpu.matmul %98, %1, %cst_19 {dimension_numbers = #tpu.dot_dimension_numbers<[1], [0], [0], [1], [0, 0, 1, 1], [], []>} : vector<8x32xf32>, vector<32x128xf32>, vector<8x128xf32> -> vector<8x128xf32>
    %101 = arith.addf %99, %100 : vector<8x128xf32>
    %102 = arith.negf %101 : vector<8x128xf32>
    %103 = math.exp %102 : vector<8x128xf32>
    %cst_20 = arith.constant 1.000000e+00 : f32
    %104 = vector.broadcast %cst_20 : f32 to vector<8x128xf32>
    %105 = arith.addf %104, %103 : vector<8x128xf32>
    %106 = arith.divf %104, %105 : vector<8x128xf32>
    %107 = math.tanh %101 : vector<8x128xf32>
    %108 = vector.extract_strided_slice %106 {offsets = [0, 0], sizes = [8, 32], strides = [1, 1]} : vector<8x128xf32> to vector<8x32xf32>
    %109 = vector.extract_strided_slice %106 {offsets = [0, 32], sizes = [8, 32], strides = [1, 1]} : vector<8x128xf32> to vector<8x32xf32>
    %110 = vector.extract_strided_slice %107 {offsets = [0, 64], sizes = [8, 32], strides = [1, 1]} : vector<8x128xf32> to vector<8x32xf32>
    %111 = vector.extract_strided_slice %106 {offsets = [0, 96], sizes = [8, 32], strides = [1, 1]} : vector<8x128xf32> to vector<8x32xf32>
    %112 = arith.mulf %109, %96 : vector<8x32xf32>
    %113 = arith.mulf %108, %110 : vector<8x32xf32>
    %114 = arith.addf %112, %113 : vector<8x32xf32>
    %115 = math.tanh %114 : vector<8x32xf32>
    %116 = arith.mulf %111, %115 : vector<8x32xf32>
    %117 = vector.extract_strided_slice %6 {offsets = [48, 0], sizes = [8, 128], strides = [1, 1]} : vector<64x128xf32> to vector<8x128xf32>
    %cst_21 = arith.constant dense<0.000000e+00> : vector<8x128xf32>
    %118 = tpu.matmul %116, %1, %cst_21 {dimension_numbers = #tpu.dot_dimension_numbers<[1], [0], [0], [1], [0, 0, 1, 1], [], []>} : vector<8x32xf32>, vector<32x128xf32>, vector<8x128xf32> -> vector<8x128xf32>
    %119 = arith.addf %117, %118 : vector<8x128xf32>
    %120 = arith.negf %119 : vector<8x128xf32>
    %121 = math.exp %120 : vector<8x128xf32>
    %cst_22 = arith.constant 1.000000e+00 : f32
    %122 = vector.broadcast %cst_22 : f32 to vector<8x128xf32>
    %123 = arith.addf %122, %121 : vector<8x128xf32>
    %124 = arith.divf %122, %123 : vector<8x128xf32>
    %125 = math.tanh %119 : vector<8x128xf32>
    %126 = vector.extract_strided_slice %124 {offsets = [0, 0], sizes = [8, 32], strides = [1, 1]} : vector<8x128xf32> to vector<8x32xf32>
    %127 = vector.extract_strided_slice %124 {offsets = [0, 32], sizes = [8, 32], strides = [1, 1]} : vector<8x128xf32> to vector<8x32xf32>
    %128 = vector.extract_strided_slice %125 {offsets = [0, 64], sizes = [8, 32], strides = [1, 1]} : vector<8x128xf32> to vector<8x32xf32>
    %129 = vector.extract_strided_slice %124 {offsets = [0, 96], sizes = [8, 32], strides = [1, 1]} : vector<8x128xf32> to vector<8x32xf32>
    %130 = arith.mulf %127, %114 : vector<8x32xf32>
    %131 = arith.mulf %126, %128 : vector<8x32xf32>
    %132 = arith.addf %130, %131 : vector<8x32xf32>
    %133 = math.tanh %132 : vector<8x32xf32>
    %134 = arith.mulf %129, %133 : vector<8x32xf32>
    %135 = vector.extract_strided_slice %6 {offsets = [56, 0], sizes = [8, 128], strides = [1, 1]} : vector<64x128xf32> to vector<8x128xf32>
    %cst_23 = arith.constant dense<0.000000e+00> : vector<8x128xf32>
    %136 = tpu.matmul %134, %1, %cst_23 {dimension_numbers = #tpu.dot_dimension_numbers<[1], [0], [0], [1], [0, 0, 1, 1], [], []>} : vector<8x32xf32>, vector<32x128xf32>, vector<8x128xf32> -> vector<8x128xf32>
    %137 = arith.addf %135, %136 : vector<8x128xf32>
    %138 = arith.negf %137 : vector<8x128xf32>
    %139 = math.exp %138 : vector<8x128xf32>
    %cst_24 = arith.constant 1.000000e+00 : f32
    %140 = vector.broadcast %cst_24 : f32 to vector<8x128xf32>
    %141 = arith.addf %140, %139 : vector<8x128xf32>
    %142 = arith.divf %140, %141 : vector<8x128xf32>
    %143 = math.tanh %137 : vector<8x128xf32>
    %144 = vector.extract_strided_slice %142 {offsets = [0, 0], sizes = [8, 32], strides = [1, 1]} : vector<8x128xf32> to vector<8x32xf32>
    %145 = vector.extract_strided_slice %142 {offsets = [0, 32], sizes = [8, 32], strides = [1, 1]} : vector<8x128xf32> to vector<8x32xf32>
    %146 = vector.extract_strided_slice %143 {offsets = [0, 64], sizes = [8, 32], strides = [1, 1]} : vector<8x128xf32> to vector<8x32xf32>
    %147 = vector.extract_strided_slice %142 {offsets = [0, 96], sizes = [8, 32], strides = [1, 1]} : vector<8x128xf32> to vector<8x32xf32>
    %148 = arith.mulf %145, %132 : vector<8x32xf32>
    %149 = arith.mulf %144, %146 : vector<8x32xf32>
    %150 = arith.addf %148, %149 : vector<8x32xf32>
    %151 = math.tanh %150 : vector<8x32xf32>
    %152 = arith.mulf %147, %151 : vector<8x32xf32>
    %c0_25 = arith.constant 0 : index
    %c0_26 = arith.constant 0 : index
    %153 = vector.load %arg5[%c0_25, %c0_26] : memref<32x128xf32, #tpu.memory_space<vmem>>, vector<32x128xf32>
    %c0_27 = arith.constant 0 : index
    %c0_28 = arith.constant 0 : index
    %154 = vector.load %arg6[%c0_27, %c0_28] : memref<1x128xf32, #tpu.memory_space<vmem>>, vector<1x128xf32>
    %c56 = arith.constant 56 : index
    %c0_29 = arith.constant 0 : index
    %155 = vector.load %arg10[%c56, %c0_29] : memref<64x32xf32, #tpu.memory_space<vmem>>, vector<8x32xf32>
    tpu.vector_store %arg10[%c56, %c0_29], %152 {strides = array<i32>} : memref<64x32xf32, #tpu.memory_space<vmem>>, vector<8x32xf32>,
    %cst_30 = arith.constant dense<0.000000e+00> : vector<8x128xf32>
    %156 = tpu.matmul %152, %153, %cst_30 {dimension_numbers = #tpu.dot_dimension_numbers<[1], [0], [0], [1], [0, 0, 1, 1], [], []>} : vector<8x32xf32>, vector<32x128xf32>, vector<8x128xf32> -> vector<8x128xf32>
    %157 = vector.broadcast %154 : vector<1x128xf32> to vector<8x128xf32>
    %158 = arith.addf %156, %157 : vector<8x128xf32>
    %159 = arith.negf %158 : vector<8x128xf32>
    %160 = math.exp %159 : vector<8x128xf32>
    %cst_31 = arith.constant 1.000000e+00 : f32
    %161 = vector.broadcast %cst_31 : f32 to vector<8x128xf32>
    %162 = arith.addf %161, %160 : vector<8x128xf32>
    %163 = arith.divf %161, %162 : vector<8x128xf32>
    %164 = math.tanh %158 : vector<8x128xf32>
    %165 = vector.extract_strided_slice %163 {offsets = [0, 0], sizes = [8, 32], strides = [1, 1]} : vector<8x128xf32> to vector<8x32xf32>
    %166 = vector.extract_strided_slice %163 {offsets = [0, 32], sizes = [8, 32], strides = [1, 1]} : vector<8x128xf32> to vector<8x32xf32>
    %167 = vector.extract_strided_slice %164 {offsets = [0, 64], sizes = [8, 32], strides = [1, 1]} : vector<8x128xf32> to vector<8x32xf32>
    %168 = vector.extract_strided_slice %163 {offsets = [0, 96], sizes = [8, 32], strides = [1, 1]} : vector<8x128xf32> to vector<8x32xf32>
    %169 = arith.mulf %166, %150 : vector<8x32xf32>
    %170 = arith.mulf %165, %167 : vector<8x32xf32>
    %171 = arith.addf %169, %170 : vector<8x32xf32>
    %172 = math.tanh %171 : vector<8x32xf32>
    %173 = arith.mulf %168, %172 : vector<8x32xf32>
    %c48 = arith.constant 48 : index
    %c0_32 = arith.constant 0 : index
    %174 = vector.load %arg10[%c48, %c0_32] : memref<64x32xf32, #tpu.memory_space<vmem>>, vector<8x32xf32>
    tpu.vector_store %arg10[%c48, %c0_32], %173 {strides = array<i32>} : memref<64x32xf32, #tpu.memory_space<vmem>>, vector<8x32xf32>,
    %cst_33 = arith.constant dense<0.000000e+00> : vector<8x128xf32>
    %175 = tpu.matmul %173, %153, %cst_33 {dimension_numbers = #tpu.dot_dimension_numbers<[1], [0], [0], [1], [0, 0, 1, 1], [], []>} : vector<8x32xf32>, vector<32x128xf32>, vector<8x128xf32> -> vector<8x128xf32>
    %176 = vector.broadcast %154 : vector<1x128xf32> to vector<8x128xf32>
    %177 = arith.addf %175, %176 : vector<8x128xf32>
    %178 = arith.negf %177 : vector<8x128xf32>
    %179 = math.exp %178 : vector<8x128xf32>
    %cst_34 = arith.constant 1.000000e+00 : f32
    %180 = vector.broadcast %cst_34 : f32 to vector<8x128xf32>
    %181 = arith.addf %180, %179 : vector<8x128xf32>
    %182 = arith.divf %180, %181 : vector<8x128xf32>
    %183 = math.tanh %177 : vector<8x128xf32>
    %184 = vector.extract_strided_slice %182 {offsets = [0, 0], sizes = [8, 32], strides = [1, 1]} : vector<8x128xf32> to vector<8x32xf32>
    %185 = vector.extract_strided_slice %182 {offsets = [0, 32], sizes = [8, 32], strides = [1, 1]} : vector<8x128xf32> to vector<8x32xf32>
    %186 = vector.extract_strided_slice %183 {offsets = [0, 64], sizes = [8, 32], strides = [1, 1]} : vector<8x128xf32> to vector<8x32xf32>
    %187 = vector.extract_strided_slice %182 {offsets = [0, 96], sizes = [8, 32], strides = [1, 1]} : vector<8x128xf32> to vector<8x32xf32>
    %188 = arith.mulf %185, %171 : vector<8x32xf32>
    %189 = arith.mulf %184, %186 : vector<8x32xf32>
    %190 = arith.addf %188, %189 : vector<8x32xf32>
    %191 = math.tanh %190 : vector<8x32xf32>
    %192 = arith.mulf %187, %191 : vector<8x32xf32>
    %c40 = arith.constant 40 : index
    %c0_35 = arith.constant 0 : index
    %193 = vector.load %arg10[%c40, %c0_35] : memref<64x32xf32, #tpu.memory_space<vmem>>, vector<8x32xf32>
    tpu.vector_store %arg10[%c40, %c0_35], %192 {strides = array<i32>} : memref<64x32xf32, #tpu.memory_space<vmem>>, vector<8x32xf32>,
    %cst_36 = arith.constant dense<0.000000e+00> : vector<8x128xf32>
    %194 = tpu.matmul %192, %153, %cst_36 {dimension_numbers = #tpu.dot_dimension_numbers<[1], [0], [0], [1], [0, 0, 1, 1], [], []>} : vector<8x32xf32>, vector<32x128xf32>, vector<8x128xf32> -> vector<8x128xf32>
    %195 = vector.broadcast %154 : vector<1x128xf32> to vector<8x128xf32>
    %196 = arith.addf %194, %195 : vector<8x128xf32>
    %197 = arith.negf %196 : vector<8x128xf32>
    %198 = math.exp %197 : vector<8x128xf32>
    %cst_37 = arith.constant 1.000000e+00 : f32
    %199 = vector.broadcast %cst_37 : f32 to vector<8x128xf32>
    %200 = arith.addf %199, %198 : vector<8x128xf32>
    %201 = arith.divf %199, %200 : vector<8x128xf32>
    %202 = math.tanh %196 : vector<8x128xf32>
    %203 = vector.extract_strided_slice %201 {offsets = [0, 0], sizes = [8, 32], strides = [1, 1]} : vector<8x128xf32> to vector<8x32xf32>
    %204 = vector.extract_strided_slice %201 {offsets = [0, 32], sizes = [8, 32], strides = [1, 1]} : vector<8x128xf32> to vector<8x32xf32>
    %205 = vector.extract_strided_slice %202 {offsets = [0, 64], sizes = [8, 32], strides = [1, 1]} : vector<8x128xf32> to vector<8x32xf32>
    %206 = vector.extract_strided_slice %201 {offsets = [0, 96], sizes = [8, 32], strides = [1, 1]} : vector<8x128xf32> to vector<8x32xf32>
    %207 = arith.mulf %204, %190 : vector<8x32xf32>
    %208 = arith.mulf %203, %205 : vector<8x32xf32>
    %209 = arith.addf %207, %208 : vector<8x32xf32>
    %210 = math.tanh %209 : vector<8x32xf32>
    %211 = arith.mulf %206, %210 : vector<8x32xf32>
    %c32 = arith.constant 32 : index
    %c0_38 = arith.constant 0 : index
    %212 = vector.load %arg10[%c32, %c0_38] : memref<64x32xf32, #tpu.memory_space<vmem>>, vector<8x32xf32>
    tpu.vector_store %arg10[%c32, %c0_38], %211 {strides = array<i32>} : memref<64x32xf32, #tpu.memory_space<vmem>>, vector<8x32xf32>,
    %cst_39 = arith.constant dense<0.000000e+00> : vector<8x128xf32>
    %213 = tpu.matmul %211, %153, %cst_39 {dimension_numbers = #tpu.dot_dimension_numbers<[1], [0], [0], [1], [0, 0, 1, 1], [], []>} : vector<8x32xf32>, vector<32x128xf32>, vector<8x128xf32> -> vector<8x128xf32>
    %214 = vector.broadcast %154 : vector<1x128xf32> to vector<8x128xf32>
    %215 = arith.addf %213, %214 : vector<8x128xf32>
    %216 = arith.negf %215 : vector<8x128xf32>
    %217 = math.exp %216 : vector<8x128xf32>
    %cst_40 = arith.constant 1.000000e+00 : f32
    %218 = vector.broadcast %cst_40 : f32 to vector<8x128xf32>
    %219 = arith.addf %218, %217 : vector<8x128xf32>
    %220 = arith.divf %218, %219 : vector<8x128xf32>
    %221 = math.tanh %215 : vector<8x128xf32>
    %222 = vector.extract_strided_slice %220 {offsets = [0, 0], sizes = [8, 32], strides = [1, 1]} : vector<8x128xf32> to vector<8x32xf32>
    %223 = vector.extract_strided_slice %220 {offsets = [0, 32], sizes = [8, 32], strides = [1, 1]} : vector<8x128xf32> to vector<8x32xf32>
    %224 = vector.extract_strided_slice %221 {offsets = [0, 64], sizes = [8, 32], strides = [1, 1]} : vector<8x128xf32> to vector<8x32xf32>
    %225 = vector.extract_strided_slice %220 {offsets = [0, 96], sizes = [8, 32], strides = [1, 1]} : vector<8x128xf32> to vector<8x32xf32>
    %226 = arith.mulf %223, %209 : vector<8x32xf32>
    %227 = arith.mulf %222, %224 : vector<8x32xf32>
    %228 = arith.addf %226, %227 : vector<8x32xf32>
    %229 = math.tanh %228 : vector<8x32xf32>
    %230 = arith.mulf %225, %229 : vector<8x32xf32>
    %c24 = arith.constant 24 : index
    %c0_41 = arith.constant 0 : index
    %231 = vector.load %arg10[%c24, %c0_41] : memref<64x32xf32, #tpu.memory_space<vmem>>, vector<8x32xf32>
    tpu.vector_store %arg10[%c24, %c0_41], %230 {strides = array<i32>} : memref<64x32xf32, #tpu.memory_space<vmem>>, vector<8x32xf32>,
    %cst_42 = arith.constant dense<0.000000e+00> : vector<8x128xf32>
    %232 = tpu.matmul %230, %153, %cst_42 {dimension_numbers = #tpu.dot_dimension_numbers<[1], [0], [0], [1], [0, 0, 1, 1], [], []>} : vector<8x32xf32>, vector<32x128xf32>, vector<8x128xf32> -> vector<8x128xf32>
    %233 = vector.broadcast %154 : vector<1x128xf32> to vector<8x128xf32>
    %234 = arith.addf %232, %233 : vector<8x128xf32>
    %235 = arith.negf %234 : vector<8x128xf32>
    %236 = math.exp %235 : vector<8x128xf32>
    %cst_43 = arith.constant 1.000000e+00 : f32
    %237 = vector.broadcast %cst_43 : f32 to vector<8x128xf32>
    %238 = arith.addf %237, %236 : vector<8x128xf32>
    %239 = arith.divf %237, %238 : vector<8x128xf32>
    %240 = math.tanh %234 : vector<8x128xf32>
    %241 = vector.extract_strided_slice %239 {offsets = [0, 0], sizes = [8, 32], strides = [1, 1]} : vector<8x128xf32> to vector<8x32xf32>
    %242 = vector.extract_strided_slice %239 {offsets = [0, 32], sizes = [8, 32], strides = [1, 1]} : vector<8x128xf32> to vector<8x32xf32>
    %243 = vector.extract_strided_slice %240 {offsets = [0, 64], sizes = [8, 32], strides = [1, 1]} : vector<8x128xf32> to vector<8x32xf32>
    %244 = vector.extract_strided_slice %239 {offsets = [0, 96], sizes = [8, 32], strides = [1, 1]} : vector<8x128xf32> to vector<8x32xf32>
    %245 = arith.mulf %242, %228 : vector<8x32xf32>
    %246 = arith.mulf %241, %243 : vector<8x32xf32>
    %247 = arith.addf %245, %246 : vector<8x32xf32>
    %248 = math.tanh %247 : vector<8x32xf32>
    %249 = arith.mulf %244, %248 : vector<8x32xf32>
    %c16 = arith.constant 16 : index
    %c0_44 = arith.constant 0 : index
    %250 = vector.load %arg10[%c16, %c0_44] : memref<64x32xf32, #tpu.memory_space<vmem>>, vector<8x32xf32>
    tpu.vector_store %arg10[%c16, %c0_44], %249 {strides = array<i32>} : memref<64x32xf32, #tpu.memory_space<vmem>>, vector<8x32xf32>,
    %cst_45 = arith.constant dense<0.000000e+00> : vector<8x128xf32>
    %251 = tpu.matmul %249, %153, %cst_45 {dimension_numbers = #tpu.dot_dimension_numbers<[1], [0], [0], [1], [0, 0, 1, 1], [], []>} : vector<8x32xf32>, vector<32x128xf32>, vector<8x128xf32> -> vector<8x128xf32>
    %252 = vector.broadcast %154 : vector<1x128xf32> to vector<8x128xf32>
    %253 = arith.addf %251, %252 : vector<8x128xf32>
    %254 = arith.negf %253 : vector<8x128xf32>
    %255 = math.exp %254 : vector<8x128xf32>
    %cst_46 = arith.constant 1.000000e+00 : f32
    %256 = vector.broadcast %cst_46 : f32 to vector<8x128xf32>
    %257 = arith.addf %256, %255 : vector<8x128xf32>
    %258 = arith.divf %256, %257 : vector<8x128xf32>
    %259 = math.tanh %253 : vector<8x128xf32>
    %260 = vector.extract_strided_slice %258 {offsets = [0, 0], sizes = [8, 32], strides = [1, 1]} : vector<8x128xf32> to vector<8x32xf32>
    %261 = vector.extract_strided_slice %258 {offsets = [0, 32], sizes = [8, 32], strides = [1, 1]} : vector<8x128xf32> to vector<8x32xf32>
    %262 = vector.extract_strided_slice %259 {offsets = [0, 64], sizes = [8, 32], strides = [1, 1]} : vector<8x128xf32> to vector<8x32xf32>
    %263 = vector.extract_strided_slice %258 {offsets = [0, 96], sizes = [8, 32], strides = [1, 1]} : vector<8x128xf32> to vector<8x32xf32>
    %264 = arith.mulf %261, %247 : vector<8x32xf32>
    %265 = arith.mulf %260, %262 : vector<8x32xf32>
    %266 = arith.addf %264, %265 : vector<8x32xf32>
    %267 = math.tanh %266 : vector<8x32xf32>
    %268 = arith.mulf %263, %267 : vector<8x32xf32>
    %c8 = arith.constant 8 : index
    %c0_47 = arith.constant 0 : index
    %269 = vector.load %arg10[%c8, %c0_47] : memref<64x32xf32, #tpu.memory_space<vmem>>, vector<8x32xf32>
    tpu.vector_store %arg10[%c8, %c0_47], %268 {strides = array<i32>} : memref<64x32xf32, #tpu.memory_space<vmem>>, vector<8x32xf32>,
    %cst_48 = arith.constant dense<0.000000e+00> : vector<8x128xf32>
    %270 = tpu.matmul %268, %153, %cst_48 {dimension_numbers = #tpu.dot_dimension_numbers<[1], [0], [0], [1], [0, 0, 1, 1], [], []>} : vector<8x32xf32>, vector<32x128xf32>, vector<8x128xf32> -> vector<8x128xf32>
    %271 = vector.broadcast %154 : vector<1x128xf32> to vector<8x128xf32>
    %272 = arith.addf %270, %271 : vector<8x128xf32>
    %273 = arith.negf %272 : vector<8x128xf32>
    %274 = math.exp %273 : vector<8x128xf32>
    %cst_49 = arith.constant 1.000000e+00 : f32
    %275 = vector.broadcast %cst_49 : f32 to vector<8x128xf32>
    %276 = arith.addf %275, %274 : vector<8x128xf32>
    %277 = arith.divf %275, %276 : vector<8x128xf32>
    %278 = math.tanh %272 : vector<8x128xf32>
    %279 = vector.extract_strided_slice %277 {offsets = [0, 0], sizes = [8, 32], strides = [1, 1]} : vector<8x128xf32> to vector<8x32xf32>
    %280 = vector.extract_strided_slice %277 {offsets = [0, 32], sizes = [8, 32], strides = [1, 1]} : vector<8x128xf32> to vector<8x32xf32>
    %281 = vector.extract_strided_slice %278 {offsets = [0, 64], sizes = [8, 32], strides = [1, 1]} : vector<8x128xf32> to vector<8x32xf32>
    %282 = vector.extract_strided_slice %277 {offsets = [0, 96], sizes = [8, 32], strides = [1, 1]} : vector<8x128xf32> to vector<8x32xf32>
    %283 = arith.mulf %280, %266 : vector<8x32xf32>
    %284 = arith.mulf %279, %281 : vector<8x32xf32>
    %285 = arith.addf %283, %284 : vector<8x32xf32>
    %286 = math.tanh %285 : vector<8x32xf32>
    %287 = arith.mulf %282, %286 : vector<8x32xf32>
    %c0_50 = arith.constant 0 : index
    %c0_51 = arith.constant 0 : index
    %288 = vector.load %arg10[%c0_50, %c0_51] : memref<64x32xf32, #tpu.memory_space<vmem>>, vector<8x32xf32>
    tpu.vector_store %arg10[%c0_50, %c0_51], %287 {strides = array<i32>} : memref<64x32xf32, #tpu.memory_space<vmem>>, vector<8x32xf32>,
    %c0_52 = arith.constant 0 : index
    %c0_53 = arith.constant 0 : index
    %289 = vector.load %arg10[%c0_52, %c0_53] : memref<64x32xf32, #tpu.memory_space<vmem>>, vector<64x32xf32>
    %c0_54 = arith.constant 0 : index
    %c0_55 = arith.constant 0 : index
    %290 = vector.load %arg7[%c0_54, %c0_55] : memref<32x8xf32, #tpu.memory_space<vmem>>, vector<32x8xf32>
    %cst_56 = arith.constant dense<0.000000e+00> : vector<64x8xf32>
    %291 = tpu.matmul %289, %290, %cst_56 {dimension_numbers = #tpu.dot_dimension_numbers<[1], [0], [0], [1], [0, 0, 1, 1], [], []>} : vector<64x32xf32>, vector<32x8xf32>, vector<64x8xf32> -> vector<64x8xf32>
    %c0_57 = arith.constant 0 : index
    %c0_58 = arith.constant 0 : index
    %292 = vector.load %arg8[%c0_57, %c0_58] : memref<1x8xf32, #tpu.memory_space<vmem>>, vector<1x8xf32>
    %293 = vector.broadcast %292 : vector<1x8xf32> to vector<64x8xf32>
    %294 = arith.addf %291, %293 : vector<64x8xf32>
    %c0_59 = arith.constant 0 : index
    %c0_60 = arith.constant 0 : index
    %295 = vector.load %arg9[%c0_59, %c0_60] : memref<64x8xf32, #tpu.memory_space<vmem>>, vector<64x8xf32>
    tpu.vector_store %arg9[%c0_59, %c0_60], %294 {strides = array<i32>} : memref<64x8xf32, #tpu.memory_space<vmem>>, vector<64x8xf32>,
    return
  }
  func.func @transform_0(%arg0: i32) -> (i32, i32) {
    %c0_i32 = arith.constant 0 : i32
    %c0_i32_0 = arith.constant 0 : i32
    return %arg0, %c0_i32 : i32, i32
  }
  func.func @transform_1(%arg0: i32) -> (i32, i32) {
    %c0_i32 = arith.constant 0 : i32
    %c0_i32_0 = arith.constant 0 : i32
    %c0_i32_1 = arith.constant 0 : i32
    return %c0_i32, %c0_i32_0 : i32, i32
  }
  func.func @transform_2(%arg0: i32) -> (i32, i32) {
    %c0_i32 = arith.constant 0 : i32
    %c0_i32_0 = arith.constant 0 : i32
    %c0_i32_1 = arith.constant 0 : i32
    return %c0_i32, %c0_i32_0 : i32, i32
  }
  func.func @transform_3(%arg0: i32) -> (i32, i32) {
    %c0_i32 = arith.constant 0 : i32
    %c0_i32_0 = arith.constant 0 : i32
    %c0_i32_1 = arith.constant 0 : i32
    return %c0_i32, %c0_i32_0 : i32, i32
  }
  func.func @transform_4(%arg0: i32) -> (i32, i32) {
    %c0_i32 = arith.constant 0 : i32
    %c0_i32_0 = arith.constant 0 : i32
    %c0_i32_1 = arith.constant 0 : i32
    return %c0_i32, %c0_i32_0 : i32, i32
  }
  func.func @transform_5(%arg0: i32) -> (i32, i32) {
    %c0_i32 = arith.constant 0 : i32
    %c0_i32_0 = arith.constant 0 : i32
    %c0_i32_1 = arith.constant 0 : i32
    return %c0_i32, %c0_i32_0 : i32, i32
  }
  func.func @transform_6(%arg0: i32) -> (i32, i32) {
    %c0_i32 = arith.constant 0 : i32
    %c0_i32_0 = arith.constant 0 : i32
    %c0_i32_1 = arith.constant 0 : i32
    return %c0_i32, %c0_i32_0 : i32, i32
  }
  func.func @transform_7(%arg0: i32) -> (i32, i32) {
    %c0_i32 = arith.constant 0 : i32
    %c0_i32_0 = arith.constant 0 : i32
    %c0_i32_1 = arith.constant 0 : i32
    return %c0_i32, %c0_i32_0 : i32, i32
  }
  func.func @transform_8(%arg0: i32) -> (i32, i32) {
    %c0_i32 = arith.constant 0 : i32
    %c0_i32_0 = arith.constant 0 : i32
    return %arg0, %c0_i32 : i32, i32
  }
}

</mosaic_0001>

<bundles_post_ra>
// kernel: tpu_custom_call.1
= control target key start
LH: loop header
LB: loop body
LE: loop exit
PB: predicated region body
PF: predicated region fallthrough
CT: control target
= control target key end

     0   :  { %vm49_vm0 = vcmask 64512   ;;  %v2427_v3 = vmov 0.0|0.0   ;;  %vm2428_vm1 = vmmov 0   ;;  %v2429_v4 = vmov 0.0   ;;  %s2431_s30 = smov 32   ;;  %s2805_s1 = inlined_call_operand.vmem [shape: f32[8,128], index: 1, kind: input, shape index: {}]   ;;  %s2806_s0 = inlined_call_operand.vmem [shape: f32[64,8], index: 0, kind: input, shape index: {}]   ;;  %s2807_s3 = inlined_call_operand.vmem [shape: f32[32,128], index: 3, kind: input, shape index: {}]   ;;  %s2808_s2 = inlined_call_operand.vmem [shape: f32[1,128], index: 2, kind: input, shape index: {}]   ;;  %s2809_s4 = inlined_call_operand.vmem [shape: f32[32,128], index: 4, kind: input, shape index: {}]   ;;  %s2810_s5 = inlined_call_operand.vmem [shape: f32[1,128], index: 5, kind: input, shape index: {}]   ;;  %s2811_s6 = inlined_call_operand.vmem [shape: f32[32,8], index: 6, kind: input, shape index: {}]   ;;  %s2812_s7 = inlined_call_operand.vmem [shape: f32[1,8], index: 7, kind: input, shape index: {}]   ;;  %s2813_s8 = inlined_call_operand.vmem [shape: f32[64,8], index: 8, kind: output, shape index: {}]  }
   0x1   :  { %v41_v0 = vld [vmem:[%s2805_s1] sm:$0xff]  ;;  %v30_v2 = vld [vmem:[%s2806_s0 + $0x8] sm:$0xff]  ;;  %2210 = vmatprep.subr.bf16.mxu1 %v2427_v3  ;;  %2038 = vmatprep.mubr.msk.f32.mxu1 %vm2428_vm1, %v2429_v4  ;;  %v31_v7 = vld [vmem:[%s2806_s0 + $0x10] sm:$0xff]  ;;  %vm179_vm2 = vcmask 261120  }
   0x2   :  { %v29_v1 = vld [vmem:[%s2806_s0] sm:$0xff]  ;;  %2005 = vmatprep.subr.mxu0 %v41_v0  ;;  %v38_v6 = vld [vmem:[%s2807_s3 + $0x8] sm:$0xff]  ;;  %v39_v9 = vld [vmem:[%s2807_s3 + $0x10] sm:$0xff] }
   0x3   :  { %2007 = vmatprep.mubr.msk.f32.mxu0 %vm49_vm0, %v29_v1  ;;  %v37_v5 = vld [vmem:[%s2807_s3] sm:$0xff]  ;;  %2006 = vmatpush3.msra.mxu0 %v41_v0  ;;  %v40_v10 = vld [vmem:[%s2807_s3 + $0x18] sm:$0xff]  ;;  %v34_v14 = vld [vmem:[%s2806_s0 + $0x28] sm:$0xff] }
   0x4   :  { %v2499_v8 = vpack.c.bf16 %v38_v6, %v37_v5  ;;  %2008 = vmatmul.mubr.msk.f32.vlgmr.msra.gmra.mrb[0].mxu0 %vm49_vm0, %v30_v2  ;;  %2204 = vmatprep.subr.bf16.mxu0 %v2427_v3  ;;  %v32_v11 = vld [vmem:[%s2806_s0 + $0x18] sm:$0xff]  ;;  %v2514_v12 = vpack.c.bf16 %v40_v10, %v39_v9  ;;  %v33_v13 = vld [vmem:[%s2806_s0 + $0x20] sm:$0xff]  ;;  %v35_v15 = vld [vmem:[%s2806_s0 + $0x30] sm:$0xff] }
   0x5   :  { %2010 = vmatprep.mubr.msk.f32.mxu0 %vm49_vm0, %v31_v7  ;;  %v36_v16 = vld [vmem:[%s2806_s0 + $0x38] sm:$0xff]  ;;  %v1861_v17 = vld [vmem:[%s2808_s2] ss:$0 sm:$0xff]  ;;  %s2430_s2 = smov 64  }
   0x6   :  { %2206 = vmatpush3.bf16.msra.mxu0 %v2499_v8  ;;  %2212 = vmatpush3.bf16.msra.mxu1 %v2499_v8 }
   0x7   :  { %2207 = vmatprep.subr.bf16.mxu0 %v2427_v3  ;;  %2213 = vmatprep.subr.bf16.mxu1 %v2427_v3 }
   0x8   :  { %2011 = vmatmul.mubr.msk.f32.gmra.mrb[2].mxu0 %vm49_vm0, %v32_v11 }
   0x9   :  { %2013 = vmatprep.mubr.msk.f32.mxu0 %vm49_vm0, %v33_v13 }
   0xa   :  { %2209 = vmatpush3.bf16.msra.mxu0 %v2514_v12  ;;  %2215 = vmatpush3.bf16.msra.mxu1 %v2514_v12 }
   0xb   :  { %2216 = vmatprep.subr.bf16.mxu0 %v2427_v3  ;;  %2222 = vmatprep.subr.bf16.mxu1 %v2427_v3 }
   0xc   :  { %2014 = vmatmul.mubr.msk.f32.gmra.mrb[4].mxu0 %vm49_vm0, %v34_v14 }
   0xd   :  { %2016 = vmatprep.mubr.msk.f32.mxu0 %vm49_vm0, %v35_v15 }
  0x10   :  { %2017 = vmatmul.mubr.msk.f32.gmra.mrb[6].mxu0 %vm49_vm0, %v36_v16 }
  0x11   :  { %2027 = vmatprep.mubr.msk.f32.mxu0 %vm2428_vm1, %v2429_v4 }
  0x14   :  { %2028 = vmatmul.mubr.f32.vlgmr.msra.gmra.mrb[8].mxu0 %v2429_v4 }
  0x15   :  { %2218 = vmatpush3.bf16.msra.mxu0 %v2499_v8  ;;  %2049 = vmatprep.mubr.msk.f32.mxu0 %vm2428_vm1, %v2429_v4 }
  0x16   :  { %2219 = vmatprep.subr.bf16.mxu0 %v2427_v3 }
  0x19   :  { %2221 = vmatpush3.bf16.msra.mxu0 %v2514_v12 }
  0x1a   :  { %2228 = vmatprep.subr.bf16.mxu0 %v2427_v3 }
  0xd7   :  { %v2009_v18 = vpop.f32.mrb[0].mxu0 }
  0xd8   :  { %v146_v19 = vadd.f32 %v2009_v18, %v1861_v17  ;;  %v140_v20 = vpop.f32.mrb[1].mxu0 }
  0xd9   :  { %v141_v33 = vadd.f32 %v1861_v17, %v140_v20 }
  0xdb   :  { %v2012_v21 = vpop.f32.mrb[2].mxu0 }
  0xdc   :  { %v2552_v22 = vadd.f32 %v2012_v21, %v1861_v17  ;;  %v150_v23 = vpop.f32.mrb[3].mxu0 }
  0xdd   :  { %v2554_v24 = vadd.f32 %v1861_v17, %v150_v23 }
  0xdf   :  { %v2015_v25 = vpop.f32.mrb[4].mxu0 }
  0xe0   :  { %v2556_v26 = vadd.f32 %v2015_v25, %v1861_v17  ;;  %v160_v27 = vpop.f32.mrb[5].mxu0 }
  0xe1   :  { %v2558_v28 = vadd.f32 %v1861_v17, %v160_v27 }
  0xe3   :  { %v2018_v29 = vpop.f32.mrb[6].mxu0 }
  0xe4   :  { %v2560_v30 = vadd.f32 %v2018_v29, %v1861_v17  ;;  %v170_v31 = vpop.f32.mrb[7].mxu0 }
  0xe5   :  { %v2562_v32 = vadd.f32 %v1861_v17, %v170_v31 }
  0xe7   :  { %v249_v34 = vpop.f32.mrb[8].mxu0 }
  0xe8   :  { %v253_v35 = vadd.f32 %v249_v34, %v141_v33  ;;  %v2029_v36 = vpop.f32.mrb[9].mxu0 }
  0xea   :  { %2307 = vtanh.f32 %v253_v35  ;;  %v1870_v38 = vmul.f32 -1.442695, %v253_v35 }
  0xec   :  { %2309 = vpow2.f32 %v1870_v38 }
  0xf4   :  { %v2308_v37 = vpop.eup %2307 }
  0xf5   :  { %263 = vrot.lane.b32.xlu0 %v2308_v37, %s2430_s2 }
  0xf6   :  { %v2310_v39 = vpop.eup %2309 }
  0xf7   :  { %v257_v40 = vadd.f32 1.0, %v2310_v39 }
  0xf9   :  { %2311 = vrcp.f32 %v257_v40 }
 0x103   :  { %v2312_v41 = vpop.eup %2311 }
 0x104   :  { %v261_v44 = vmul.f32 0.0, %v2312_v41 }
 0x167   :  { %v264_v42 = vpop.permute.xlu0 %263 }
 0x168   :  { %v266_v43 = vmul.f32 %v2312_v41, %v264_v42 }
 0x16a   :  { %268 = vrot.lane.b32.xlu0 %v266_v43, %s2431_s30 }
 0x1dc   :  { %v269_v45 = vpop.permute.xlu0 %268 }
 0x1dd   :  { %v271_v46 = vadd.f32 %v269_v45, %v261_v44 }
 0x1df   :  { %2313 = vtanh.f32 %v271_v46 }
 0x1e9   :  { %v2314_v47 = vpop.eup %2313 }
 0x1ea   :  { %274 = vrot.lane.b32.xlu1 %v2314_v47, %s2430_s2 }
 0x25c   :  { %v275_v48 = vpop.permute.xlu1 %274 }
 0x25d   :  { %v277_v49 = vmul.f32 %v2312_v41, %v275_v48 }
 0x25f   :  { %279 = vrot.lane.b32.xlu1 %v277_v49, %s2431_s30 }
 0x2d1   :  { %v280_v50 = vpop.permute.xlu1 %279 }
 0x2d2   :  { %2039 = vmatmul.mubr.msk.f32.vlgmr.msra.gmra.mrb[0].mxu1 %vm179_vm2, %v280_v50 }
 0x2d3   :  { %2224 = vmatpush3.bf16.msra.mxu1 %v2499_v8  ;;  %2060 = vmatprep.mubr.msk.f32.mxu1 %vm2428_vm1, %v2429_v4 }
 0x2d4   :  { %2225 = vmatprep.subr.bf16.mxu1 %v2427_v3 }
 0x2d7   :  { %2227 = vmatpush3.bf16.msra.mxu1 %v2514_v12 }
 0x2d8   :  { %2234 = vmatprep.subr.bf16.mxu1 %v2427_v3 }
 0x3a5   :  { %v349_v51 = vpop.f32.mrb[0].mxu1 }
 0x3a6   :  { %v353_v52 = vadd.f32 %v349_v51, %v146_v19  ;;  %v2040_v53 = vpop.f32.mrb[1].mxu1 }
 0x3a8   :  { %2315 = vtanh.f32 %v353_v52  ;;  %v1872_v55 = vmul.f32 -1.442695, %v353_v52 }
 0x3aa   :  { %2317 = vpow2.f32 %v1872_v55 }
 0x3b2   :  { %v2316_v54 = vpop.eup %2315 }
 0x3b3   :  { %363 = vrot.lane.b32.xlu0 %v2316_v54, %s2430_s2 }
 0x3b4   :  { %v2318_v56 = vpop.eup %2317 }
 0x3b5   :  { %v357_v57 = vadd.f32 1.0, %v2318_v56 }
 0x3b7   :  { %2319 = vrcp.f32 %v357_v57 }
 0x3c1   :  { %v2320_v58 = vpop.eup %2319 }
 0x3c2   :  { %v361_v61 = vmul.f32 %v2320_v58, %v271_v46 }
 0x425   :  { %v364_v59 = vpop.permute.xlu0 %363 }
 0x426   :  { %v366_v60 = vmul.f32 %v2320_v58, %v364_v59 }
 0x428   :  { %368 = vrot.lane.b32.xlu1 %v366_v60, %s2431_s30 }
 0x49a   :  { %v369_v62 = vpop.permute.xlu1 %368 }
 0x49b   :  { %v371_v63 = vadd.f32 %v369_v62, %v361_v61 }
 0x49d   :  { %2321 = vtanh.f32 %v371_v63 }
 0x4a7   :  { %v2322_v0 = vpop.eup %2321 }
 0x4a8   :  { %374 = vrot.lane.b32.xlu0 %v2322_v0, %s2430_s2 }
 0x51a   :  { %v375_v1 = vpop.permute.xlu0 %374 }
 0x51b   :  { %v377_v2 = vmul.f32 %v2320_v58, %v375_v1 }
 0x51d   :  { %379 = vrot.lane.b32.xlu1 %v377_v2, %s2431_s30 }
 0x58f   :  { %v380_v5 = vpop.permute.xlu1 %379 }
 0x590   :  { %2050 = vmatmul.mubr.msk.f32.vlgmr.msra.gmra.mrb[10].mxu0 %vm179_vm2, %v380_v5 }
 0x591   :  { %2230 = vmatpush3.bf16.msra.mxu0 %v2499_v8  ;;  %2071 = vmatprep.mubr.msk.f32.mxu0 %vm2428_vm1, %v2429_v4 }
 0x592   :  { %2231 = vmatprep.subr.bf16.mxu0 %v2427_v3 }
 0x595   :  { %2233 = vmatpush3.bf16.msra.mxu0 %v2514_v12 }
 0x596   :  { %2240 = vmatprep.subr.bf16.mxu0 %v2427_v3 }
 0x663   :  { %v449_v6 = vpop.f32.mrb[10].mxu0 }
 0x664   :  { %v453_v7 = vadd.f32 %v449_v6, %v2554_v24  ;;  %v2051_v9 = vpop.f32.mrb[11].mxu0 }
 0x666   :  { %2323 = vtanh.f32 %v453_v7  ;;  %v1874_v11 = vmul.f32 -1.442695, %v453_v7 }
 0x668   :  { %2325 = vpow2.f32 %v1874_v11 }
 0x670   :  { %v2324_v10 = vpop.eup %2323 }
 0x671   :  { %463 = vrot.lane.b32.xlu0 %v2324_v10, %s2430_s2 }
 0x672   :  { %v2326_v13 = vpop.eup %2325 }
 0x673   :  { %v457_v14 = vadd.f32 1.0, %v2326_v13 }
 0x675   :  { %2327 = vrcp.f32 %v457_v14 }
 0x67f   :  { %v2328_v15 = vpop.eup %2327 }
 0x680   :  { %v461_v18 = vmul.f32 %v2328_v15, %v371_v63 }
 0x6e3   :  { %v464_v16 = vpop.permute.xlu0 %463 }
 0x6e4   :  { %v466_v17 = vmul.f32 %v2328_v15, %v464_v16 }
 0x6e6   :  { %468 = vrot.lane.b32.xlu1 %v466_v17, %s2431_s30 }
 0x758   :  { %v469_v19 = vpop.permute.xlu1 %468 }
 0x759   :  { %v471_v20 = vadd.f32 %v469_v19, %v461_v18 }
 0x75b   :  { %2329 = vtanh.f32 %v471_v20 }
 0x765   :  { %v2330_v21 = vpop.eup %2329 }
 0x766   :  { %474 = vrot.lane.b32.xlu0 %v2330_v21, %s2430_s2 }
 0x7d8   :  { %v475_v23 = vpop.permute.xlu0 %474 }
 0x7d9   :  { %v477_v24 = vmul.f32 %v2328_v15, %v475_v23 }
 0x7db   :  { %479 = vrot.lane.b32.xlu1 %v477_v24, %s2431_s30 }
 0x84d   :  { %v480_v25 = vpop.permute.xlu1 %479 }
 0x84e   :  { %2061 = vmatmul.mubr.msk.f32.vlgmr.msra.gmra.mrb[2].mxu1 %vm179_vm2, %v480_v25 }
 0x84f   :  { %2236 = vmatpush3.bf16.msra.mxu1 %v2499_v8  ;;  %2082 = vmatprep.mubr.msk.f32.mxu1 %vm2428_vm1, %v2429_v4 }
 0x850   :  { %2237 = vmatprep.subr.bf16.mxu1 %v2427_v3 }
 0x853   :  { %2239 = vmatpush3.bf16.msra.mxu1 %v2514_v12 }
 0x854   :  { %2246 = vmatprep.subr.bf16.mxu1 %v2427_v3 }
 0x921   :  { %v549_v27 = vpop.f32.mrb[2].mxu1 }
 0x922   :  { %v553_v29 = vadd.f32 %v549_v27, %v2552_v22  ;;  %v2062_v31 = vpop.f32.mrb[3].mxu1 }
 0x924   :  { %2331 = vtanh.f32 %v553_v29  ;;  %v1876_v34 = vmul.f32 -1.442695, %v553_v29 }
 0x926   :  { %2333 = vpow2.f32 %v1876_v34 }
 0x92e   :  { %v2332_v33 = vpop.eup %2331 }
 0x92f   :  { %563 = vrot.lane.b32.xlu0 %v2332_v33, %s2430_s2 }
 0x930   :  { %v2334_v35 = vpop.eup %2333 }
 0x931   :  { %v557_v36 = vadd.f32 1.0, %v2334_v35 }
 0x933   :  { %2335 = vrcp.f32 %v557_v36 }
 0x93d   :  { %v2336_v37 = vpop.eup %2335 }
 0x93e   :  { %v561_v40 = vmul.f32 %v2336_v37, %v471_v20 }
 0x9a1   :  { %v564_v38 = vpop.permute.xlu0 %563 }
 0x9a2   :  { %v566_v39 = vmul.f32 %v2336_v37, %v564_v38 }
 0x9a4   :  { %568 = vrot.lane.b32.xlu1 %v566_v39, %s2431_s30 }
 0xa16   :  { %v569_v41 = vpop.permute.xlu1 %568 }
 0xa17   :  { %v571_v42 = vadd.f32 %v569_v41, %v561_v40 }
 0xa19   :  { %2337 = vtanh.f32 %v571_v42 }
 0xa23   :  { %v2338_v22 = vpop.eup %2337 }
 0xa24   :  { %574 = vrot.lane.b32.xlu0 %v2338_v22, %s2430_s2 }
 0xa96   :  { %v575_v43 = vpop.permute.xlu0 %574 }
 0xa97   :  { %v577_v44 = vmul.f32 %v2336_v37, %v575_v43 }
 0xa99   :  { %579 = vrot.lane.b32.xlu1 %v577_v44, %s2431_s30 }
 0xb0b   :  { %v580_v45 = vpop.permute.xlu1 %579 }
 0xb0c   :  { %2072 = vmatmul.mubr.msk.f32.vlgmr.msra.gmra.mrb[12].mxu0 %vm179_vm2, %v580_v45 }
 0xb0d   :  { %2242 = vmatpush3.bf16.msra.mxu0 %v2499_v8  ;;  %2093 = vmatprep.mubr.msk.f32.mxu0 %vm2428_vm1, %v2429_v4 }
 0xb0e   :  { %2243 = vmatprep.subr.bf16.mxu0 %v2427_v3 }
 0xb11   :  { %2245 = vmatpush3.bf16.msra.mxu0 %v2514_v12 }
 0xb12   :  { %2252 = vmatprep.subr.bf16.mxu0 %v2427_v3 }
 0xbdf   :  { %v649_v46 = vpop.f32.mrb[12].mxu0 }
 0xbe0   :  { %v653_v47 = vadd.f32 %v649_v46, %v2558_v28  ;;  %v2073_v48 = vpop.f32.mrb[13].mxu0 }
 0xbe2   :  { %2339 = vtanh.f32 %v653_v47  ;;  %v1878_v50 = vmul.f32 -1.442695, %v653_v47 }
 0xbe4   :  { %2341 = vpow2.f32 %v1878_v50  ;;  %v980_v50 = vld [vmem:[%s2809_s4 + $0x10] sm:$0xff] }
 0xbec   :  { %v2340_v49 = vpop.eup %2339 }
 0xbed   :  { %663 = vrot.lane.b32.xlu0 %v2340_v49, %s2430_s2  ;;  %v979_v49 = vld [vmem:[%s2809_s4 + $0x8] sm:$0xff] }
 0xbee   :  { %v2342_v51 = vpop.eup %2341 }
 0xbef   :  { %v657_v52 = vadd.f32 1.0, %v2342_v51 }
 0xbf1   :  { %2343 = vrcp.f32 %v657_v52  ;;  %v981_v52 = vld [vmem:[%s2809_s4 + $0x18] sm:$0xff] }
 0xbfb   :  { %v2344_v53 = vpop.eup %2343 }
 0xbfc   :  { %v661_v56 = vmul.f32 %v2344_v53, %v571_v42 }
 0xc5f   :  { %v664_v54 = vpop.permute.xlu0 %663 }
 0xc60   :  { %v666_v55 = vmul.f32 %v2344_v53, %v664_v54 }
 0xc62   :  { %668 = vrot.lane.b32.xlu1 %v666_v55, %s2431_s30 }
 0xcd4   :  { %v669_v57 = vpop.permute.xlu1 %668 }
 0xcd5   :  { %v671_v58 = vadd.f32 %v669_v57, %v661_v56 }
 0xcd7   :  { %2345 = vtanh.f32 %v671_v58 }
 0xce1   :  { %v2346_v28 = vpop.eup %2345 }
 0xce2   :  { %674 = vrot.lane.b32.xlu0 %v2346_v28, %s2430_s2 }
 0xd54   :  { %v675_v59 = vpop.permute.xlu0 %674 }
 0xd55   :  { %v677_v60 = vmul.f32 %v2344_v53, %v675_v59  ;;  %v2656_v53 = vpack.c.bf16 %v981_v52, %v980_v50 }
 0xd57   :  { %679 = vrot.lane.b32.xlu1 %v677_v60, %s2431_s30 }
 0xdc9   :  { %v680_v61 = vpop.permute.xlu1 %679 }
 0xdca   :  { %2083 = vmatmul.mubr.msk.f32.vlgmr.msra.gmra.mrb[4].mxu1 %vm179_vm2, %v680_v61 }
 0xdcb   :  { %2248 = vmatpush3.bf16.msra.mxu1 %v2499_v8  ;;  %2104 = vmatprep.mubr.msk.f32.mxu1 %vm2428_vm1, %v2429_v4 }
 0xdcc   :  { %2249 = vmatprep.subr.bf16.mxu1 %v2427_v3 }
 0xdcf   :  { %2251 = vmatpush3.bf16.msra.mxu1 %v2514_v12 }
 0xdd0   :  { %2258 = vmatprep.subr.bf16.mxu1 %v2427_v3 }
 0xe9d   :  { %v749_v62 = vpop.f32.mrb[4].mxu1 }
 0xe9e   :  { %v753_v63 = vadd.f32 %v749_v62, %v2556_v26  ;;  %v2084_v0 = vpop.f32.mrb[5].mxu1 }
 0xea0   :  { %2347 = vtanh.f32 %v753_v63  ;;  %v1880_v2 = vmul.f32 -1.442695, %v753_v63 }
 0xea2   :  { %2349 = vpow2.f32 %v1880_v2 }
 0xeaa   :  { %v2348_v1 = vpop.eup %2347 }
 0xeab   :  { %763 = vrot.lane.b32.xlu0 %v2348_v1, %s2430_s2 }
 0xeac   :  { %v2350_v8 = vpop.eup %2349 }
 0xead   :  { %v757_v5 = vadd.f32 1.0, %v2350_v8 }
 0xeaf   :  { %2351 = vrcp.f32 %v757_v5 }
 0xeb9   :  { %v2352_v6 = vpop.eup %2351 }
 0xeba   :  { %v761_v12 = vmul.f32 %v2352_v6, %v671_v58  ;;  %v2678_v58 = vld [vmem:[%s2810_s5] ss:$0 sm:$0xff] }
 0xf1d   :  { %v764_v7 = vpop.permute.xlu0 %763 }
 0xf1e   :  { %v766_v9 = vmul.f32 %v2352_v6, %v764_v7 }
 0xf20   :  { %768 = vrot.lane.b32.xlu1 %v766_v9, %s2431_s30 }
 0xf92   :  { %v769_v10 = vpop.permute.xlu1 %768 }
 0xf93   :  { %v771_v11 = vadd.f32 %v769_v10, %v761_v12 }
 0xf95   :  { %2353 = vtanh.f32 %v771_v11 }
 0xf9f   :  { %v2354_v26 = vpop.eup %2353 }
 0xfa0   :  { %774 = vrot.lane.b32.xlu0 %v2354_v26, %s2430_s2 }
0x1012   :  { %v775_v13 = vpop.permute.xlu0 %774 }
0x1013   :  { %v777_v14 = vmul.f32 %v2352_v6, %v775_v13 }
0x1015   :  { %779 = vrot.lane.b32.xlu1 %v777_v14, %s2431_s30 }
0x1087   :  { %v780_v15 = vpop.permute.xlu1 %779 }
0x1088   :  { %2094 = vmatmul.mubr.msk.f32.vlgmr.msra.gmra.mrb[14].mxu0 %vm179_vm2, %v780_v15 }
0x1089   :  { %2115 = vmatprep.mubr.msk.f32.mxu0 %vm2428_vm1, %v2429_v4 }
0x115b   :  { %v849_v16 = vpop.f32.mrb[14].mxu0 }
0x115c   :  { %v853_v17 = vadd.f32 %v849_v16, %v2562_v32  ;;  %v2095_v18 = vpop.f32.mrb[15].mxu0 }
0x115e   :  { %2355 = vtanh.f32 %v853_v17  ;;  %v1882_v20 = vmul.f32 -1.442695, %v853_v17 }
0x1160   :  { %2357 = vpow2.f32 %v1882_v20 }
0x1168   :  { %v2356_v19 = vpop.eup %2355 }
0x1169   :  { %863 = vrot.lane.b32.xlu0 %v2356_v19, %s2430_s2 }
0x116a   :  { %v2358_v21 = vpop.eup %2357 }
0x116b   :  { %v857_v23 = vadd.f32 1.0, %v2358_v21 }
0x116d   :  { %2359 = vrcp.f32 %v857_v23 }
0x1177   :  { %v2360_v24 = vpop.eup %2359 }
0x1178   :  { %v861_v29 = vmul.f32 %v2360_v24, %v771_v11 }
0x11db   :  { %v864_v25 = vpop.permute.xlu0 %863 }
0x11dc   :  { %v866_v27 = vmul.f32 %v2360_v24, %v864_v25 }
0x11de   :  { %868 = vrot.lane.b32.xlu1 %v866_v27, %s2431_s30 }
0x1250   :  { %v869_v31 = vpop.permute.xlu1 %868 }
0x1251   :  { %v871_v33 = vadd.f32 %v869_v31, %v861_v29 }
0x1253   :  { %2361 = vtanh.f32 %v871_v33 }
0x125d   :  { %v2362_v32 = vpop.eup %2361 }
0x125e   :  { %874 = vrot.lane.b32.xlu0 %v2362_v32, %s2430_s2 }
0x12d0   :  { %v875_v34 = vpop.permute.xlu0 %874 }
0x12d1   :  { %v877_v35 = vmul.f32 %v2360_v24, %v875_v34 }
0x12d3   :  { %879 = vrot.lane.b32.xlu1 %v877_v35, %s2431_s30 }
0x1345   :  { %v880_v36 = vpop.permute.xlu1 %879 }
0x1346   :  { %2105 = vmatmul.mubr.msk.f32.vlgmr.msra.gmra.mrb[6].mxu1 %vm179_vm2, %v880_v36 }
0x1347   :  { %2126 = vmatprep.mubr.msk.f32.mxu1 %vm2428_vm1, %v2429_v4 }
0x1419   :  { %v949_v37 = vpop.f32.mrb[6].mxu1 }
0x141a   :  { %v953_v38 = vadd.f32 %v949_v37, %v2560_v30  ;;  %v2106_v39 = vpop.f32.mrb[7].mxu1  ;;  %v978_v30 = vld [vmem:[%s2809_s4] sm:$0xff] }
0x141b   :  { %v2650_v51 = vpack.c.bf16 %v979_v49, %v978_v30 }
0x141c   :  { %2363 = vtanh.f32 %v953_v38  ;;  %v1884_v41 = vmul.f32 -1.442695, %v953_v38 }
0x141d   :  { %2254 = vmatpush3.bf16.msra.mxu0 %v2650_v51  ;;  %2260 = vmatpush3.bf16.msra.mxu1 %v2650_v51 }
0x141e   :  { %2365 = vpow2.f32 %v1884_v41  ;;  %2255 = vmatprep.subr.bf16.mxu0 %v2427_v3  ;;  %2261 = vmatprep.subr.bf16.mxu1 %v2427_v3 }
0x1421   :  { %2257 = vmatpush3.bf16.msra.mxu0 %v2656_v53  ;;  %2263 = vmatpush3.bf16.msra.mxu1 %v2656_v53 }
0x1422   :  { %2264 = vmatprep.subr.bf16.mxu0 %v2427_v3  ;;  %2270 = vmatprep.subr.bf16.mxu1 %v2427_v3 }
0x1426   :  { %v2364_v40 = vpop.eup %2363 }
0x1427   :  { %963 = vrot.lane.b32.xlu0 %v2364_v40, %s2430_s2 }
0x1428   :  { %v2366_v42 = vpop.eup %2365 }
0x1429   :  { %v957_v22 = vadd.f32 1.0, %v2366_v42 }
0x142b   :  { %2367 = vrcp.f32 %v957_v22 }
0x1435   :  { %v2368_v43 = vpop.eup %2367 }
0x1436   :  { %v961_v46 = vmul.f32 %v2368_v43, %v871_v33 }
0x1499   :  { %v964_v44 = vpop.permute.xlu0 %963 }
0x149a   :  { %v966_v45 = vmul.f32 %v2368_v43, %v964_v44 }
0x149c   :  { %968 = vrot.lane.b32.xlu1 %v966_v45, %s2431_s30 }
0x150e   :  { %v969_v47 = vpop.permute.xlu1 %968 }
0x150f   :  { %v971_v48 = vadd.f32 %v969_v47, %v961_v46 }
0x1511   :  { %2369 = vtanh.f32 %v971_v48 }
0x151b   :  { %v2370_v54 = vpop.eup %2369 }
0x151c   :  { %974 = vrot.lane.b32.xlu0 %v2370_v54, %s2430_s2 }
0x158e   :  { %v975_v55 = vpop.permute.xlu0 %974 }
0x158f   :  { %v977_v56 = vmul.f32 %v2368_v43, %v975_v55 }
0x1591   :  { %984 = vrot.lane.b32.xlu1 %v977_v56, %s2431_s30 }
0x1603   :  { %v985_v57 = vpop.permute.xlu1 %984 }
0x1604   :  { %987 = vst.msk [vmem:[#allocation2 + $0x38] sm:$0xff] %vm179_vm2, %v985_v57  ;;  %2116 = vmatmul.mubr.msk.f32.vlgmr.msra.gmra.mrb[16].mxu0 %vm179_vm2, %v985_v57 }
0x1605   :  { %2266 = vmatpush3.bf16.msra.mxu0 %v2650_v51  ;;  %2137 = vmatprep.mubr.msk.f32.mxu0 %vm2428_vm1, %v2429_v4 }
0x1606   :  { %2267 = vmatprep.subr.bf16.mxu0 %v2427_v3 }
0x1609   :  { %2269 = vmatpush3.bf16.msra.mxu0 %v2656_v53 }
0x160a   :  { %2276 = vmatprep.subr.bf16.mxu0 %v2427_v3 }
0x16d7   :  { %v1062_v28 = vpop.f32.mrb[16].mxu0 }
0x16d8   :  { %v1063_v59 = vadd.f32 %v2678_v58, %v1062_v28  ;;  %v2117_v60 = vpop.f32.mrb[17].mxu0 }
0x16da   :  { %2371 = vtanh.f32 %v1063_v59  ;;  %v1887_v62 = vmul.f32 -1.442695, %v1063_v59 }
0x16dc   :  { %2373 = vpow2.f32 %v1887_v62 }
0x16e4   :  { %v2372_v61 = vpop.eup %2371 }
0x16e5   :  { %1075 = vrot.lane.b32.xlu0 %v2372_v61, %s2430_s2 }
0x16e6   :  { %v2374_v63 = vpop.eup %2373 }
0x16e7   :  { %v1069_v0 = vadd.f32 1.0, %v2374_v63 }
0x16e9   :  { %2375 = vrcp.f32 %v1069_v0 }
0x16f3   :  { %v2376_v1 = vpop.eup %2375 }
0x16f4   :  { %v1073_v5 = vmul.f32 %v2376_v1, %v971_v48 }
0x1757   :  { %v1076_v2 = vpop.permute.xlu0 %1075 }
0x1758   :  { %v1078_v8 = vmul.f32 %v2376_v1, %v1076_v2 }
0x175a   :  { %1080 = vrot.lane.b32.xlu1 %v1078_v8, %s2431_s30 }
0x17cc   :  { %v1081_v6 = vpop.permute.xlu1 %1080 }
0x17cd   :  { %v1083_v7 = vadd.f32 %v1081_v6, %v1073_v5 }
0x17cf   :  { %2377 = vtanh.f32 %v1083_v7 }
0x17d9   :  { %v2378_v9 = vpop.eup %2377 }
0x17da   :  { %1086 = vrot.lane.b32.xlu0 %v2378_v9, %s2430_s2 }
0x184c   :  { %v1087_v12 = vpop.permute.xlu0 %1086 }
0x184d   :  { %v1089_v10 = vmul.f32 %v2376_v1, %v1087_v12 }
0x184f   :  { %1091 = vrot.lane.b32.xlu1 %v1089_v10, %s2431_s30 }
0x18c1   :  { %v1092_v11 = vpop.permute.xlu1 %1091 }
0x18c2   :  { %1094 = vst.msk [vmem:[#allocation2 + $0x30] sm:$0xff] %vm179_vm2, %v1092_v11  ;;  %2127 = vmatmul.mubr.msk.f32.vlgmr.msra.gmra.mrb[8].mxu1 %vm179_vm2, %v1092_v11 }
0x18c3   :  { %2272 = vmatpush3.bf16.msra.mxu1 %v2650_v51  ;;  %2148 = vmatprep.mubr.msk.f32.mxu1 %vm2428_vm1, %v2429_v4 }
0x18c4   :  { %2273 = vmatprep.subr.bf16.mxu1 %v2427_v3 }
0x18c7   :  { %2275 = vmatpush3.bf16.msra.mxu1 %v2656_v53 }
0x18c8   :  { %2282 = vmatprep.subr.bf16.mxu1 %v2427_v3 }
0x1995   :  { %v1163_v26 = vpop.f32.mrb[8].mxu1 }
0x1996   :  { %v1164_v13 = vadd.f32 %v2678_v58, %v1163_v26  ;;  %v2128_v14 = vpop.f32.mrb[9].mxu1 }
0x1998   :  { %2379 = vtanh.f32 %v1164_v13  ;;  %v1889_v16 = vmul.f32 -1.442695, %v1164_v13 }
0x199a   :  { %2381 = vpow2.f32 %v1889_v16 }
0x19a2   :  { %v2380_v15 = vpop.eup %2379 }
0x19a3   :  { %1176 = vrot.lane.b32.xlu0 %v2380_v15, %s2430_s2 }
0x19a4   :  { %v2382_v17 = vpop.eup %2381 }
0x19a5   :  { %v1170_v18 = vadd.f32 1.0, %v2382_v17 }
0x19a7   :  { %2383 = vrcp.f32 %v1170_v18 }
0x19b1   :  { %v2384_v19 = vpop.eup %2383 }
0x19b2   :  { %v1174_v23 = vmul.f32 %v2384_v19, %v1083_v7 }
0x1a15   :  { %v1177_v20 = vpop.permute.xlu0 %1176 }
0x1a16   :  { %v1179_v21 = vmul.f32 %v2384_v19, %v1177_v20 }
0x1a18   :  { %1181 = vrot.lane.b32.xlu1 %v1179_v21, %s2431_s30 }
0x1a8a   :  { %v1182_v24 = vpop.permute.xlu1 %1181 }
0x1a8b   :  { %v1184_v25 = vadd.f32 %v1182_v24, %v1174_v23 }
0x1a8d   :  { %2385 = vtanh.f32 %v1184_v25 }
0x1a97   :  { %v2386_v27 = vpop.eup %2385 }
0x1a98   :  { %1187 = vrot.lane.b32.xlu0 %v2386_v27, %s2430_s2 }
0x1b0a   :  { %v1188_v29 = vpop.permute.xlu0 %1187 }
0x1b0b   :  { %v1190_v31 = vmul.f32 %v2384_v19, %v1188_v29 }
0x1b0d   :  { %1192 = vrot.lane.b32.xlu1 %v1190_v31, %s2431_s30 }
0x1b7f   :  { %v1193_v33 = vpop.permute.xlu1 %1192 }
0x1b80   :  { %1195 = vst.msk [vmem:[#allocation2 + $0x28] sm:$0xff] %vm179_vm2, %v1193_v33  ;;  %2138 = vmatmul.mubr.msk.f32.vlgmr.msra.gmra.mrb[18].mxu0 %vm179_vm2, %v1193_v33 }
0x1b81   :  { %2278 = vmatpush3.bf16.msra.mxu0 %v2650_v51  ;;  %2159 = vmatprep.mubr.msk.f32.mxu0 %vm2428_vm1, %v2429_v4 }
0x1b82   :  { %2279 = vmatprep.subr.bf16.mxu0 %v2427_v3 }
0x1b85   :  { %2281 = vmatpush3.bf16.msra.mxu0 %v2656_v53 }
0x1b86   :  { %2288 = vmatprep.subr.bf16.mxu0 %v2427_v3 }
0x1c53   :  { %v1264_v32 = vpop.f32.mrb[18].mxu0 }
0x1c54   :  { %v1265_v34 = vadd.f32 %v2678_v58, %v1264_v32  ;;  %v2139_v35 = vpop.f32.mrb[19].mxu0 }
0x1c56   :  { %2387 = vtanh.f32 %v1265_v34  ;;  %v1891_v37 = vmul.f32 -1.442695, %v1265_v34 }
0x1c58   :  { %2389 = vpow2.f32 %v1891_v37 }
0x1c60   :  { %v2388_v36 = vpop.eup %2387 }
0x1c61   :  { %1277 = vrot.lane.b32.xlu0 %v2388_v36, %s2430_s2 }
0x1c62   :  { %v2390_v38 = vpop.eup %2389 }
0x1c63   :  { %v1271_v39 = vadd.f32 1.0, %v2390_v38 }
0x1c65   :  { %2391 = vrcp.f32 %v1271_v39 }
0x1c6f   :  { %v2392_v40 = vpop.eup %2391 }
0x1c70   :  { %v1275_v22 = vmul.f32 %v2392_v40, %v1184_v25 }
0x1cd3   :  { %v1278_v41 = vpop.permute.xlu0 %1277 }
0x1cd4   :  { %v1280_v42 = vmul.f32 %v2392_v40, %v1278_v41 }
0x1cd6   :  { %1282 = vrot.lane.b32.xlu1 %v1280_v42, %s2431_s30 }
0x1d48   :  { %v1283_v43 = vpop.permute.xlu1 %1282 }
0x1d49   :  { %v1285_v44 = vadd.f32 %v1283_v43, %v1275_v22 }
0x1d4b   :  { %2393 = vtanh.f32 %v1285_v44 }
0x1d55   :  { %v2394_v45 = vpop.eup %2393 }
0x1d56   :  { %1288 = vrot.lane.b32.xlu0 %v2394_v45, %s2430_s2 }
0x1dc8   :  { %v1289_v46 = vpop.permute.xlu0 %1288 }
0x1dc9   :  { %v1291_v47 = vmul.f32 %v2392_v40, %v1289_v46 }
0x1dcb   :  { %1293 = vrot.lane.b32.xlu1 %v1291_v47, %s2431_s30 }
0x1e3d   :  { %v1294_v48 = vpop.permute.xlu1 %1293 }
0x1e3e   :  { %1296 = vst.msk [vmem:[#allocation2 + $0x20] sm:$0xff] %vm179_vm2, %v1294_v48  ;;  %2149 = vmatmul.mubr.msk.f32.vlgmr.msra.gmra.mrb[10].mxu1 %vm179_vm2, %v1294_v48 }
0x1e3f   :  { %2284 = vmatpush3.bf16.msra.mxu1 %v2650_v51  ;;  %2170 = vmatprep.mubr.msk.f32.mxu1 %vm2428_vm1, %v2429_v4 }
0x1e40   :  { %2285 = vmatprep.subr.bf16.mxu1 %v2427_v3 }
0x1e43   :  { %2287 = vmatpush3.bf16.msra.mxu1 %v2656_v53 }
0x1f11   :  { %v1365_v30 = vpop.f32.mrb[10].mxu1 }
0x1f12   :  { %v1366_v49 = vadd.f32 %v2678_v58, %v1365_v30  ;;  %v2150_v50 = vpop.f32.mrb[11].mxu1 }
0x1f13   :  { %v1710_v50 = vld [vmem:[%s2811_s6 + $0x8] sm:$0xff] }
0x1f14   :  { %2395 = vtanh.f32 %v1366_v49  ;;  %v1893_v54 = vmul.f32 -1.442695, %v1366_v49  ;;  %v1709_v49 = vld [vmem:[%s2811_s6] sm:$0xff] }
0x1f16   :  { %2397 = vpow2.f32 %v1893_v54  ;;  %v1711_v54 = vld [vmem:[%s2811_s6 + $0x10] sm:$0xff] }
0x1f1e   :  { %v2396_v52 = vpop.eup %2395 }
0x1f1f   :  { %1378 = vrot.lane.b32.xlu0 %v2396_v52, %s2430_s2  ;;  %v2294_v52 = vpack.c.bf16 %v1710_v50, %v1709_v49 }
0x1f20   :  { %v2398_v55 = vpop.eup %2397 }
0x1f21   :  { %v1372_v56 = vadd.f32 1.0, %v2398_v55  ;;  %v1712_v55 = vld [vmem:[%s2811_s6 + $0x18] sm:$0xff]  ;;  %2295 = vmatprep.subr.bf16.mxu1 %v2294_v52 }
0x1f23   :  { %2399 = vrcp.f32 %v1372_v56  ;;  %v2298_v56 = vpack.c.bf16 %v1712_v55, %v1711_v54 }
0x1f2d   :  { %v2400_v57 = vpop.eup %2399 }
0x1f2e   :  { %v1376_v60 = vmul.f32 %v2400_v57, %v1285_v44 }
0x1f91   :  { %v1379_v28 = vpop.permute.xlu0 %1378 }
0x1f92   :  { %v1381_v59 = vmul.f32 %v2400_v57, %v1379_v28 }
0x1f94   :  { %1383 = vrot.lane.b32.xlu1 %v1381_v59, %s2431_s30 }
0x2006   :  { %v1384_v61 = vpop.permute.xlu1 %1383 }
0x2007   :  { %v1386_v62 = vadd.f32 %v1384_v61, %v1376_v60 }
0x2009   :  { %2401 = vtanh.f32 %v1386_v62 }
0x2013   :  { %v2402_v63 = vpop.eup %2401 }
0x2014   :  { %1389 = vrot.lane.b32.xlu0 %v2402_v63, %s2430_s2 }
0x2086   :  { %v1390_v0 = vpop.permute.xlu0 %1389 }
0x2087   :  { %v1392_v1 = vmul.f32 %v2400_v57, %v1390_v0  ;;  %v1705_v0 = vld [vmem:[#allocation2 + $0x20] sm:$0xff] }
0x2089   :  { %1394 = vrot.lane.b32.xlu1 %v1392_v1, %s2431_s30  ;;  %v1706_v1 = vld [vmem:[#allocation2 + $0x28] sm:$0xff] }
0x20fb   :  { %v1395_v2 = vpop.permute.xlu1 %1394 }
0x20fc   :  { %1397 = vst.msk [vmem:[#allocation2 + $0x18] sm:$0xff] %vm179_vm2, %v1395_v2  ;;  %2160 = vmatmul.mubr.msk.f32.vlgmr.msra.gmra.mrb[20].mxu0 %vm179_vm2, %v1395_v2  ;;  %v1707_v2 = vld [vmem:[#allocation2 + $0x30] sm:$0xff] }
0x20fd   :  { %2290 = vmatpush3.bf16.msra.mxu0 %v2650_v51  ;;  %2181 = vmatprep.mubr.msk.f32.mxu0 %vm2428_vm1, %v2429_v4 }
0x20fe   :  { %2291 = vmatprep.subr.bf16.mxu0 %v2427_v3 }
0x2101   :  { %2293 = vmatpush3.bf16.msra.mxu0 %v2656_v53 }
0x2103   :  { %v1704_v63 = vld [vmem:[#allocation2 + $0x18] sm:$0xff] }
0x21cf   :  { %v1466_v8 = vpop.f32.mrb[20].mxu0 }
0x21d0   :  { %v1467_v5 = vadd.f32 %v2678_v58, %v1466_v8  ;;  %v2161_v6 = vpop.f32.mrb[21].mxu0  ;;  %v1708_v8 = vld [vmem:[#allocation2 + $0x38] sm:$0xff] }
0x21d2   :  { %2403 = vtanh.f32 %v1467_v5  ;;  %v1895_v9 = vmul.f32 -1.442695, %v1467_v5  ;;  %v1900_v5 = vld [vmem:[%s2812_s7] ss:$0 sm:$0xff] }
0x21d4   :  { %2405 = vpow2.f32 %v1895_v9 }
0x21dc   :  { %v2404_v7 = vpop.eup %2403 }
0x21dd   :  { %1479 = vrot.lane.b32.xlu0 %v2404_v7, %s2430_s2 }
0x21de   :  { %v2406_v12 = vpop.eup %2405 }
0x21df   :  { %v1473_v10 = vadd.f32 1.0, %v2406_v12 }
0x21e1   :  { %2407 = vrcp.f32 %v1473_v10 }
0x21eb   :  { %v2408_v51 = vpop.eup %2407 }
0x21ec   :  { %v1477_v3 = vmul.f32 %v2408_v51, %v1386_v62 }
0x224f   :  { %v1480_v11 = vpop.permute.xlu0 %1479 }
0x2250   :  { %v1482_v4 = vmul.f32 %v2408_v51, %v1480_v11 }
0x2252   :  { %1484 = vrot.lane.b32.xlu1 %v1482_v4, %s2431_s30 }
0x22c4   :  { %v1485_v53 = vpop.permute.xlu1 %1484 }
0x22c5   :  { %v1487_v26 = vadd.f32 %v1485_v53, %v1477_v3 }
0x22c7   :  { %2409 = vtanh.f32 %v1487_v26 }
0x22d1   :  { %v2410_v13 = vpop.eup %2409 }
0x22d2   :  { %1490 = vrot.lane.b32.xlu0 %v2410_v13, %s2430_s2 }
0x2344   :  { %v1491_v14 = vpop.permute.xlu0 %1490 }
0x2345   :  { %v1493_v15 = vmul.f32 %v2408_v51, %v1491_v14 }
0x2347   :  { %1495 = vrot.lane.b32.xlu1 %v1493_v15, %s2431_s30 }
0x23b9   :  { %v1496_v16 = vpop.permute.xlu1 %1495 }
0x23ba   :  { %1498 = vst.msk [vmem:[#allocation2 + $0x10] sm:$0xff] %vm179_vm2, %v1496_v16  ;;  %2171 = vmatmul.mubr.msk.f32.vlgmr.msra.gmra.mrb[12].mxu1 %vm179_vm2, %v1496_v16 }
0x23bb   :  { %2297 = vmatpush3.bf16.msra.mxu1 %v2294_v52 }
0x23bc   :  { %2299 = vmatprep.subr.bf16.mxu1 %v2298_v56 }
0x23bf   :  { %2301 = vmatpush3.bf16.msra.mxu1 %v2298_v56 }
0x23c1   :  { %v1703_v62 = vld [vmem:[#allocation2 + $0x10] sm:$0xff] }
0x248d   :  { %v1567_v17 = vpop.f32.mrb[12].mxu1 }
0x248e   :  { %v1568_v18 = vadd.f32 %v2678_v58, %v1567_v17  ;;  %v2172_v19 = vpop.f32.mrb[13].mxu1 }
0x2490   :  { %2411 = vtanh.f32 %v1568_v18  ;;  %v1897_v21 = vmul.f32 -1.442695, %v1568_v18 }
0x2492   :  { %2413 = vpow2.f32 %v1897_v21 }
0x249a   :  { %v2412_v20 = vpop.eup %2411 }
0x249b   :  { %1580 = vrot.lane.b32.xlu0 %v2412_v20, %s2430_s2 }
0x249c   :  { %v2414_v23 = vpop.eup %2413 }
0x249d   :  { %v1574_v24 = vadd.f32 1.0, %v2414_v23 }
0x249f   :  { %2415 = vrcp.f32 %v1574_v24 }
0x24a9   :  { %v2416_v25 = vpop.eup %2415 }
0x24aa   :  { %v1578_v31 = vmul.f32 %v2416_v25, %v1487_v26 }
0x250d   :  { %v1581_v27 = vpop.permute.xlu0 %1580 }
0x250e   :  { %v1583_v29 = vmul.f32 %v2416_v25, %v1581_v27 }
0x2510   :  { %1585 = vrot.lane.b32.xlu1 %v1583_v29, %s2431_s30 }
0x2582   :  { %v1586_v33 = vpop.permute.xlu1 %1585 }
0x2583   :  { %v1588_v32 = vadd.f32 %v1586_v33, %v1578_v31 }
0x2585   :  { %2417 = vtanh.f32 %v1588_v32 }
0x258f   :  { %v2418_v34 = vpop.eup %2417 }
0x2590   :  { %1591 = vrot.lane.b32.xlu0 %v2418_v34, %s2430_s2 }
0x2602   :  { %v1592_v35 = vpop.permute.xlu0 %1591 }
0x2603   :  { %v1594_v36 = vmul.f32 %v2416_v25, %v1592_v35 }
0x2605   :  { %1596 = vrot.lane.b32.xlu1 %v1594_v36, %s2431_s30 }
0x2677   :  { %v1597_v37 = vpop.permute.xlu1 %1596 }
0x2678   :  { %1599 = vst.msk [vmem:[#allocation2 + $0x8] sm:$0xff] %vm179_vm2, %v1597_v37  ;;  %2182 = vmatmul.mubr.msk.f32.vlgmr.msra.gmra.mrb[22].mxu0 %vm179_vm2, %v1597_v37 }
0x267f   :  { %v1702_v61 = vld [vmem:[#allocation2 + $0x8] sm:$0xff] }
0x274b   :  { %v1668_v38 = vpop.f32.mrb[22].mxu0 }
0x274c   :  { %v1669_v39 = vadd.f32 %v2678_v58, %v1668_v38  ;;  %v2183_v40 = vpop.f32.mrb[23].mxu0 }
0x274e   :  { %2419 = vtanh.f32 %v1669_v39  ;;  %v1899_v42 = vmul.f32 -1.442695, %v1669_v39 }
0x2750   :  { %2421 = vpow2.f32 %v1899_v42 }
0x2758   :  { %v2420_v41 = vpop.eup %2419 }
0x2759   :  { %1681 = vrot.lane.b32.xlu0 %v2420_v41, %s2430_s2 }
0x275a   :  { %v2422_v22 = vpop.eup %2421 }
0x275b   :  { %v1675_v43 = vadd.f32 1.0, %v2422_v22 }
0x275d   :  { %2423 = vrcp.f32 %v1675_v43 }
0x2767   :  { %v2424_v44 = vpop.eup %2423 }
0x2768   :  { %v1679_v47 = vmul.f32 %v2424_v44, %v1588_v32 }
0x27cb   :  { %v1682_v45 = vpop.permute.xlu0 %1681 }
0x27cc   :  { %v1684_v46 = vmul.f32 %v2424_v44, %v1682_v45 }
0x27ce   :  { %1686 = vrot.lane.b32.xlu1 %v1684_v46, %s2431_s30 }
0x2840   :  { %v1687_v48 = vpop.permute.xlu1 %1686 }
0x2841   :  { %v1689_v30 = vadd.f32 %v1687_v48, %v1679_v47 }
0x2843   :  { %2425 = vtanh.f32 %v1689_v30 }
0x284d   :  { %v2426_v58 = vpop.eup %2425 }
0x284e   :  { %1692 = vrot.lane.b32.xlu0 %v2426_v58, %s2430_s2 }
0x28c0   :  { %v1693_v57 = vpop.permute.xlu0 %1692 }
0x28c1   :  { %v1695_v28 = vmul.f32 %v2424_v44, %v1693_v57 }
0x28c3   :  { %1697 = vrot.lane.b32.xlu1 %v1695_v28, %s2431_s30 }
0x2935   :  { %v1698_v59 = vpop.permute.xlu1 %1697 }
0x2936   :  { %1700 = vst.msk [vmem:[#allocation2] sm:$0xff] %vm179_vm2, %v1698_v59 }
0x293d   :  { %v1701_v60 = vld [vmem:[#allocation2] sm:$0xff] }
0x293e   :  { %2192 = vmatprep.mubr.msk.f32.mxu1 %vm179_vm2, %v1701_v60 }
0x293f   :  { %2193 = vmatmul.mubr.msk.f32.vlgmr.msra.gmra.mrb[14].mxu1 %vm179_vm2, %v1702_v61 }
0x2940   :  { %2195 = vmatprep.mubr.msk.f32.mxu1 %vm179_vm2, %v1703_v62 }
0x2943   :  { %2196 = vmatmul.mubr.msk.f32.gmra.mrb[16].mxu1 %vm179_vm2, %v1704_v63 }
0x2944   :  { %2198 = vmatprep.mubr.msk.f32.mxu1 %vm179_vm2, %v1705_v0 }
0x2947   :  { %2199 = vmatmul.mubr.msk.f32.gmra.mrb[18].mxu1 %vm179_vm2, %v1706_v1 }
0x2948   :  { %2201 = vmatprep.mubr.msk.f32.mxu1 %vm179_vm2, %v1707_v2 }
0x294b   :  { %2202 = vmatmul.mubr.msk.f32.gmra.mrb[20].mxu1 %vm179_vm2, %v1708_v8 }
0x2a12   :  { %v2194_v6 = vpop.f32.mrb[14].mxu1 }
0x2a13   :  { %v1816_v7 = vadd.f32 %v2194_v6, %v1900_v5  ;;  %v1810_v9 = vpop.f32.mrb[15].mxu1 }
0x2a14   :  { %v1811_v12 = vadd.f32 %v1900_v5, %v1810_v9 }
0x2a15   :  { %1850 = vst.msk [vmem:[%s2813_s8 + $0x8] sm:$0xff] %vm49_vm0, %v1816_v7 }
0x2a16   :  { %1849 = vst.msk [vmem:[%s2813_s8] sm:$0xff] %vm49_vm0, %v1811_v12  ;;  %v2197_v10 = vpop.f32.mrb[16].mxu1 }
0x2a17   :  { %v1826_v51 = vadd.f32 %v2197_v10, %v1900_v5  ;;  %v1820_v11 = vpop.f32.mrb[17].mxu1 }
0x2a18   :  { %v1821_v4 = vadd.f32 %v1900_v5, %v1820_v11 }
0x2a19   :  { %1852 = vst.msk [vmem:[%s2813_s8 + $0x18] sm:$0xff] %vm49_vm0, %v1826_v51 }
0x2a1a   :  { %1851 = vst.msk [vmem:[%s2813_s8 + $0x10] sm:$0xff] %vm49_vm0, %v1821_v4  ;;  %v2200_v3 = vpop.f32.mrb[18].mxu1 }
0x2a1b   :  { %v1836_v53 = vadd.f32 %v2200_v3, %v1900_v5  ;;  %v1830_v26 = vpop.f32.mrb[19].mxu1 }
0x2a1c   :  { %v1831_v13 = vadd.f32 %v1900_v5, %v1830_v26 }
0x2a1d   :  { %1854 = vst.msk [vmem:[%s2813_s8 + $0x28] sm:$0xff] %vm49_vm0, %v1836_v53 }
0x2a1e   :  { %1853 = vst.msk [vmem:[%s2813_s8 + $0x20] sm:$0xff] %vm49_vm0, %v1831_v13  ;;  %v2203_v14 = vpop.f32.mrb[20].mxu1 }
0x2a1f   :  { %v1846_v15 = vadd.f32 %v2203_v14, %v1900_v5  ;;  %v1840_v16 = vpop.f32.mrb[21].mxu1 }
0x2a20   :  { %v1841_v17 = vadd.f32 %v1900_v5, %v1840_v16 }
0x2a21   :  { %1856 = vst.msk [vmem:[%s2813_s8 + $0x38] sm:$0xff] %vm49_vm0, %v1846_v15 }
0x2a22   :  { %1855 = vst.msk [vmem:[%s2813_s8 + $0x30] sm:$0xff] %vm49_vm0, %v1841_v17 }

</bundles_post_ra>
